<compile_context>
chip_gen: v6e
topology: v6e:2x2x1
jax: 0.10.0
libtpu: 0.0.40
codegen_flags: <defaults>
</compile_context>

<pallas_src>
import jax
import jax.numpy as jnp
from jax.experimental import pallas as pl
from jax.experimental.pallas import tpu as pltpu

FEAT_DIM = 1280
NUM_CLASSES = 100
LOGIT_PAD = 128          # lane-dense padded class dimension (100 -> 128)


def _device_budgets():
    """(x-block target bytes, vmem_limit_bytes) tuned per TPU generation."""
    kind = ""
    try:
        kind = jax.devices()[0].device_kind.lower()
    except Exception:
        pass
    if "v7" in kind:                      # 64 MiB VMEM/TC, 3.2 TB/s HBM
        return 6 << 20, 48 << 20
    if "v6" in kind:                      # 128 MiB VMEM, ~1.4 TB/s HBM
        return 12 << 20, 64 << 20
    if "v5" in kind:                      # 128 MiB VMEM, ~0.8 TB/s HBM
        return 8 << 20, 48 << 20
    return 4 << 20, 40 << 20              # conservative default


def _pick_tb(B, C, row_align=8, max_rows=256):
    """Batch tile.  Legal tiles need tb == B (block == full array) or
    tb % 8 == 0 with (tb*C) % row_align == 0 (sublane alignment of the x block
    AND of the (tb, LOGIT_PAD) output block).  Prefer >= 2 batch grid steps so
    dimension_semantics=('parallel', ...) actually shards across v7x's 2 TCs."""
    legal = [tb for tb in range(1, B + 1)
             if B % tb == 0 and (tb == B or (tb % 8 == 0 and (tb * C) % row_align == 0))]
    small = [tb for tb in legal if tb * C <= max_rows]
    multi = [tb for tb in small if B // tb >= 2]
    even = [tb for tb in multi if (B // tb) % 2 == 0]
    if even:
        return max(even)
    if multi:
        return max(multi)
    if small:
        return max(small)
    # Bound rows (thw shrinks to compensate) rather than blowing VMEM with tb=B.
    return min(legal)


def _pick_thw(HW, rows, lane, target_bytes, itemsize, max_fold=64):
    """Largest multiple-of-`lane` divisor of HW whose x block fits the byte budget
    and keeps n_fold = thw/lane <= max_fold (bounds the static fold-loop unroll)."""
    if lane == HW:
        return HW
    cap = max(lane, target_bytes // max(1, rows * itemsize))
    cap = min(cap, max_fold * lane, HW)
    cap = max(lane, (cap // lane) * lane)
    d = cap
    while d >= lane:
        if HW % d == 0:
            return d
        d -= lane
    return lane


def _make_kernel(lane, n_fold, inv_hw):
    n_acc = min(4, n_fold)   # 4 independent accumulators -> fill all 4 VALU slots

    def kernel(x_ref, we_ref, be_ref, wc_ref, bc_ref, sel_ref, oh_ref,
               o_ref, psum_ref):
        hw_idx = pl.program_id(1)

        @pl.when(hw_idx == 0)
        def _init():
            psum_ref[...] = jnp.zeros_like(psum_ref)

        # Fold the THW lanes of this block into a `lane`-wide partial sum.
        # Per-slice ref loads (static, 128-aligned) keep vld->vadd tightly
        # pipelined; n_acc independent accumulators cut the serial VALU chain
        # ~4x; the bf16->f32 upcast rides in the same VALU slots.
        accs = [x_ref[:, k * lane:(k + 1) * lane].astype(jnp.float32)
                for k in range(n_acc)]
        for k in range(n_acc, n_fold):
            a = k % n_acc
            accs[a] = accs[a] + x_ref[:, k * lane:(k + 1) * lane].astype(jnp.float32)
        part = accs[0]
        for a in range(1, n_acc):
            part = part + accs[a]
        psum_ref[...] += part

        @pl.when(hw_idx == pl.num_programs(1) - 1)
        def _finalize():
            # Single cross-lane reduce per row -> pooled means (rows, 1).
            pooled = jnp.sum(psum_ref[...], axis=-1, keepdims=True) * inv_hw
            # Scatter the pooled column into (rows, CP) channel slots and collapse
            # rows -> batch with the 0/1 selector matmul.  This is the reshape-free
            # equivalent of pooled.reshape(tb, C) @ w_enc: no tb-fold replicated
            # w_enc in HBM/VMEM and no in-kernel sublane->lane relayout, at the
            # cost of two tiny once-per-batch-tile matmuls.
            pc = jnp.dot(sel_ref[...], pooled * oh_ref[...],
                         preferred_element_type=jnp.float32)            # (tb, CP)
            feat = jnp.dot(pc, we_ref[...],
                           preferred_element_type=jnp.float32)          # (tb, 1280)
            # TODO(synk): PyTorch nn.GELU defaults to the exact erf form; the tanh
            # approximation is kept for the stand-in encoder head (EUP-friendly).
            feat = jax.nn.gelu(feat + be_ref[...], approximate=True)
            # ClassificationModel.classifier: Linear(1280 -> num_classes),
            # emitted lane-dense (padded to 128).
            logits = jnp.dot(feat, wc_ref[...],
                             preferred_element_type=jnp.float32) + bc_ref[...]
            o_ref[...] = logits.astype(o_ref.dtype)

    return kernel


def classification_forward(x_nchw, w_enc, b_enc, w_cls, b_cls, *,
                           tb=None, thw=None, stream_dtype=jnp.bfloat16):
    """x_nchw: (B, C, H, W) -> logits (B, NUM_CLASSES) float32."""
    B, C, H, W = x_nchw.shape
    HW = H * W
    assert w_enc.shape == (C, FEAT_DIM)
    assert w_cls.shape == (FEAT_DIM, NUM_CLASSES)

    target_bytes, vmem_limit = _device_budgets()
    itemsize = jnp.dtype(stream_dtype).itemsize
    row_align = max(8, 32 // (8 * itemsize) * 8)     # 8 for f32, 16 for bf16
    lane = 128 if HW % 128 == 0 else HW
    if tb is None:
        tb = _pick_tb(B, C, row_align=row_align)
    rows = tb * C
    if thw is None:
        thw = _pick_thw(HW, rows, lane, target_bytes, itemsize)
    assert B % tb == 0 and HW % thw == 0 and thw % lane == 0
    n_fold = thw // lane
    n_b, n_hw = B // tb, HW // thw
    CP = max(128, ((C + 127) // 128) * 128)          # lane-padded channel dim

    # --- glue reshapes / padding (plain JAX, outside the kernel) ---
    x_flat = x_nchw.astype(stream_dtype).reshape(B * C, HW)     # the only streamed tensor
    w_enc_cp = jnp.zeros((CP, FEAT_DIM), jnp.float32).at[:C, :].set(
        w_enc.astype(jnp.float32))
    b_enc2 = b_enc.astype(jnp.float32).reshape(1, FEAT_DIM)
    w_cls_pad = jnp.zeros((FEAT_DIM, LOGIT_PAD), jnp.float32).at[:, :NUM_CLASSES].set(
        w_cls.astype(jnp.float32))
    b_cls_pad = jnp.zeros((1, LOGIT_PAD), jnp.float32).at[:, :NUM_CLASSES].set(
        b_cls.astype(jnp.float32))
    # sel[b, r] = 1 iff row r of the x block belongs to batch-tile row b.
    # oh[r, c]  = 1 iff row r of the x block is channel c (lane-padded to CP).
    sel = (jax.lax.broadcasted_iota(jnp.int32, (tb, rows), 1) // C
           == jax.lax.broadcasted_iota(jnp.int32, (tb, rows), 0)).astype(jnp.float32)
    oh = (jax.lax.broadcasted_iota(jnp.int32, (rows, CP), 0) % C
          == jax.lax.broadcasted_iota(jnp.int32, (rows, CP), 1)).astype(jnp.float32)

    kernel = _make_kernel(lane, n_fold, 1.0 / float(HW))

    resident = lambda bi, hi: (0, 0)    # constant index_map: stays in VMEM all steps
    # TODO(synk): residents never change across grid steps; pipeline_mode=
    # pl.Buffered(1) would halve their VMEM footprint (matters most on v7x) —
    # left at the default double-buffering to keep lowering risk at zero.
    grid_spec = pltpu.PrefetchScalarGridSpec(
        num_scalar_prefetch=0,
        grid=(n_b, n_hw),
        in_specs=[
            pl.BlockSpec((rows, thw), lambda bi, hi: (bi, hi)),       # x (streamed)
            pl.BlockSpec((CP, FEAT_DIM), resident),                   # w_enc (chan-padded)
            pl.BlockSpec((1, FEAT_DIM), resident),                    # b_enc
            pl.BlockSpec((FEAT_DIM, LOGIT_PAD), resident),            # w_cls (padded)
            pl.BlockSpec((1, LOGIT_PAD), resident),                   # b_cls (padded)
            pl.BlockSpec((tb, rows), resident),                       # batch selector
            pl.BlockSpec((rows, CP), resident),                       # channel one-hot
        ],
        out_specs=pl.BlockSpec((tb, LOGIT_PAD), lambda bi, hi: (bi, 0)),
        scratch_shapes=[pltpu.VMEM((rows, lane), jnp.float32)],
    )

    cost = pl.CostEstimate(
        flops=int(B * C * HW + 2 * B * rows * CP + 2 * B * CP * FEAT_DIM
                  + 2 * B * FEAT_DIM * LOGIT_PAD),
        transcendentals=int(B * FEAT_DIM),
        bytes_accessed=int(x_flat.size * itemsize
                           + 4 * (w_enc_cp.size + b_enc2.size + w_cls_pad.size
                                  + b_cls_pad.size + sel.size + oh.size
                                  + B * LOGIT_PAD)),
    )

    logits_pad = pl.pallas_call(
        kernel,
        out_shape=jax.ShapeDtypeStruct((B, LOGIT_PAD), jnp.float32),
        grid_spec=grid_spec,
        compiler_params=pltpu.CompilerParams(
            dimension_semantics=("parallel", "arbitrary"),
            vmem_limit_bytes=vmem_limit,
        ),
        cost_estimate=cost,
    )(x_flat, w_enc_cp, b_enc2, w_cls_pad, b_cls_pad, sel, oh)

    return logits_pad[:, :NUM_CLASSES]


def init_params(key, in_channels):
    k1, k2, k3, k4 = jax.random.split(key, 4)
    # Encoder stand-in projection (C -> 1280)
    lim_e = 1.0 / jnp.sqrt(jnp.float32(in_channels))
    w_enc = jax.random.uniform(k1, (in_channels, FEAT_DIM), jnp.float32,
                               minval=-lim_e, maxval=lim_e)
    b_enc = jax.random.uniform(k2, (FEAT_DIM,), jnp.float32,
                               minval=-lim_e, maxval=lim_e)
    # Classifier Linear(1280, 100) with PyTorch-style uniform(+-1/sqrt(fan_in))
    lim_c = 1.0 / jnp.sqrt(jnp.float32(FEAT_DIM))
    w_cls = jax.random.uniform(k3, (FEAT_DIM, NUM_CLASSES), jnp.float32,
                               minval=-lim_c, maxval=lim_c)
    b_cls = jax.random.uniform(k4, (NUM_CLASSES,), jnp.float32,
                               minval=-lim_c, maxval=lim_c)
    return w_enc, b_enc, w_cls, b_cls


if __name__ == "__main__":
    key = jax.random.PRNGKey(0)
    kx, kp = jax.random.split(key)

    B, C, H, W = 2, 4, 16, 16
    x = jax.random.normal(kx, (B, C, H, W), dtype=jnp.float32)
    w_enc, b_enc, w_cls, b_cls = init_params(kp, C)

    # Default path: bf16-streamed x, auto-picked thw (= full HW here) -> exercises
    # the multi-slice fold with independent accumulators.
    logits_bf16 = classification_forward(x, w_enc, b_enc, w_cls, b_cls)
    # f32-streamed path with thw=128 to force a 2-step spatial-reduction grid ->
    # exercises the pl.when init / accumulate / finalize path, exact f32 semantics.
    logits_f32 = classification_forward(x, w_enc, b_enc, w_cls, b_cls,
                                        thw=128, stream_dtype=jnp.float32)
    logits_bf16, logits_f32 = jax.block_until_ready((logits_bf16, logits_f32))

    # Pure-JAX references of the same math.
    def reference(x_in):
        pooled = jnp.mean(x_in.astype(jnp.float32).reshape(B, C, H * W), axis=-1)
        feat = jax.nn.gelu(pooled @ w_enc + b_enc, approximate=True)
        return feat @ w_cls + b_cls

    ref_f32 = reference(x)
    ref_bf16 = reference(x.astype(jnp.bfloat16))   # matched-precision pooling input

    assert logits_f32.shape == (B, NUM_CLASSES)
    assert logits_bf16.shape == (B, NUM_CLASSES)
    assert jnp.allclose(logits_f32, ref_f32, atol=2e-4, rtol=2e-4)
    assert jnp.allclose(logits_bf16, ref_bf16, atol=2e-4, rtol=2e-4)

    print("KERNEL_OK")
</pallas_src>

<mosaic_0001>
module attributes {stable_mosaic.version = 11 : i64} {
  func.func @kernel(%arg0: i32, %arg1: i32, %arg2: memref<8x256xbf16, #tpu.memory_space<vmem>>, %arg3: memref<128x1280xf32, #tpu.memory_space<vmem>>, %arg4: memref<1x1280xf32, #tpu.memory_space<vmem>>, %arg5: memref<1280x128xf32, #tpu.memory_space<vmem>>, %arg6: memref<1x128xf32, #tpu.memory_space<vmem>>, %arg7: memref<2x8xf32, #tpu.memory_space<vmem>>, %arg8: memref<8x128xf32, #tpu.memory_space<vmem>>, %arg9: memref<2x128xf32, #tpu.memory_space<vmem>>, %arg10: memref<8x128xf32, #tpu.memory_space<vmem>>) attributes {dimension_semantics = [#tpu.dimension_semantics<parallel>, #tpu.dimension_semantics<arbitrary>], iteration_bounds = array<i64: 1, 1>, scalar_prefetch = 0 : i64, scratch_operands = 1 : i64, tpu.core_type = #tpu.core_type<tc>, window_params = [{transform_indices = @transform_0, window_bounds = array<i64: 8, 256>}, {pipeline_mode = #tpu.pipeline_mode<synchronous>, transform_indices = @transform_1, window_bounds = array<i64: 128, 1280>}, {pipeline_mode = #tpu.pipeline_mode<synchronous>, transform_indices = @transform_2, window_bounds = array<i64: 1, 1280>}, {pipeline_mode = #tpu.pipeline_mode<synchronous>, transform_indices = @transform_3, window_bounds = array<i64: 1280, 128>}, {pipeline_mode = #tpu.pipeline_mode<synchronous>, transform_indices = @transform_4, window_bounds = array<i64: 1, 128>}, {pipeline_mode = #tpu.pipeline_mode<synchronous>, transform_indices = @transform_5, window_bounds = array<i64: 2, 8>}, {pipeline_mode = #tpu.pipeline_mode<synchronous>, transform_indices = @transform_6, window_bounds = array<i64: 8, 128>}, {transform_indices = @transform_7, window_bounds = array<i64: 2, 128>}]} {
    %c0_i32 = arith.constant 0 : i32
    %0 = arith.cmpi eq, %arg1, %c0_i32 : i32
    %1 = arith.extui %0 : i1 to i32
    %c0_i32_0 = arith.constant 0 : i32
    %2 = arith.cmpi ne, %1, %c0_i32_0 : i32
    scf.if %2 {
      %cst = arith.constant 0.000000e+00 : f32
      %14 = vector.broadcast %cst : f32 to vector<8x128xf32>
      %c0_9 = arith.constant 0 : index
      %c0_10 = arith.constant 0 : index
      %15 = vector.load %arg10[%c0_9, %c0_10] : memref<8x128xf32, #tpu.memory_space<vmem>>, vector<8x128xf32>
      tpu.vector_store %arg10[%c0_9, %c0_10], %14 {strides = array<i32>} : memref<8x128xf32, #tpu.memory_space<vmem>>, vector<8x128xf32>,
    } else {
    }
    %c0 = arith.constant 0 : index
    %c0_1 = arith.constant 0 : index
    %3 = vector.load %arg2[%c0, %c0_1] : memref<8x256xbf16, #tpu.memory_space<vmem>>, vector<8x128xbf16>
    %4 = arith.extf %3 : vector<8x128xbf16> to vector<8x128xf32>
    %c0_2 = arith.constant 0 : index
    %c128 = arith.constant 128 : index
    %5 = vector.load %arg2[%c0_2, %c128] : memref<8x256xbf16, #tpu.memory_space<vmem>>, vector<8x128xbf16>
    %6 = arith.extf %5 : vector<8x128xbf16> to vector<8x128xf32>
    %7 = arith.addf %4, %6 : vector<8x128xf32>
    %c0_3 = arith.constant 0 : index
    %c0_4 = arith.constant 0 : index
    %8 = vector.load %arg10[%c0_3, %c0_4] : memref<8x128xf32, #tpu.memory_space<vmem>>, vector<8x128xf32>
    %9 = arith.addf %8, %7 : vector<8x128xf32>
    %c0_5 = arith.constant 0 : index
    %c0_6 = arith.constant 0 : index
    %10 = vector.load %arg10[%c0_5, %c0_6] : memref<8x128xf32, #tpu.memory_space<vmem>>, vector<8x128xf32>
    tpu.vector_store %arg10[%c0_5, %c0_6], %9 {strides = array<i32>} : memref<8x128xf32, #tpu.memory_space<vmem>>, vector<8x128xf32>,
    %c0_i32_7 = arith.constant 0 : i32
    %11 = arith.cmpi eq, %arg1, %c0_i32_7 : i32
    %12 = arith.extui %11 : i1 to i32
    %c0_i32_8 = arith.constant 0 : i32
    %13 = arith.cmpi ne, %12, %c0_i32_8 : i32
    scf.if %13 {
      %c0_9 = arith.constant 0 : index
      %c0_10 = arith.constant 0 : index
      %14 = vector.load %arg10[%c0_9, %c0_10] : memref<8x128xf32, #tpu.memory_space<vmem>>, vector<8x128xf32>
      %cst = arith.constant dense<0.000000e+00> : vector<8xf32>
      %15 = vector.multi_reduction <add>, %14, %cst [1] : vector<8x128xf32> to vector<8xf32>
      %16 = vector.shape_cast %15 : vector<8xf32> to vector<8x1xf32>
      %cst_11 = arith.constant 3.906250e-03 : f32
      %17 = vector.broadcast %cst_11 : f32 to vector<8x1xf32>
      %18 = arith.mulf %16, %17 : vector<8x1xf32>
      %c0_12 = arith.constant 0 : index
      %c0_13 = arith.constant 0 : index
      %19 = vector.load %arg7[%c0_12, %c0_13] : memref<2x8xf32, #tpu.memory_space<vmem>>, vector<2x8xf32>
      %c0_14 = arith.constant 0 : index
      %c0_15 = arith.constant 0 : index
      %20 = vector.load %arg8[%c0_14, %c0_15] : memref<8x128xf32, #tpu.memory_space<vmem>>, vector<8x128xf32>
      %21 = vector.broadcast %18 : vector<8x1xf32> to vector<8x128xf32>
      %22 = arith.mulf %21, %20 : vector<8x128xf32>
      %cst_16 = arith.constant dense<0.000000e+00> : vector<2x128xf32>
      %23 = tpu.matmul %19, %22, %cst_16 {dimension_numbers = #tpu.dot_dimension_numbers<[1], [0], [0], [1], [0, 0, 1, 1], [], []>} : vector<2x8xf32>, vector<8x128xf32>, vector<2x128xf32> -> vector<2x128xf32>
      %c0_17 = arith.constant 0 : index
      %c0_18 = arith.constant 0 : index
      %24 = vector.load %arg3[%c0_17, %c0_18] : memref<128x1280xf32, #tpu.memory_space<vmem>>, vector<128x1280xf32>
      %cst_19 = arith.constant dense<0.000000e+00> : vector<2x1280xf32>
      %25 = tpu.matmul %23, %24, %cst_19 {dimension_numbers = #tpu.dot_dimension_numbers<[1], [0], [0], [1], [0, 0, 1, 1], [], []>} : vector<2x128xf32>, vector<128x1280xf32>, vector<2x1280xf32> -> vector<2x1280xf32>
      %c0_20 = arith.constant 0 : index
      %c0_21 = arith.constant 0 : index
      %26 = vector.load %arg4[%c0_20, %c0_21] : memref<1x1280xf32, #tpu.memory_space<vmem>>, vector<1x1280xf32>
      %27 = vector.broadcast %26 : vector<1x1280xf32> to vector<2x1280xf32>
      %28 = arith.addf %25, %27 : vector<2x1280xf32>
      %29 = arith.mulf %28, %28 : vector<2x1280xf32>
      %30 = arith.mulf %28, %29 : vector<2x1280xf32>
      %cst_22 = arith.constant 4.471500e-02 : f32
      %31 = vector.broadcast %cst_22 : f32 to vector<2x1280xf32>
      %32 = arith.mulf %31, %30 : vector<2x1280xf32>
      %33 = arith.addf %28, %32 : vector<2x1280xf32>
      %cst_23 = arith.constant 0.797884583 : f32
      %34 = vector.broadcast %cst_23 : f32 to vector<2x1280xf32>
      %35 = arith.mulf %34, %33 : vector<2x1280xf32>
      %36 = math.tanh %35 : vector<2x1280xf32>
      %cst_24 = arith.constant 1.000000e+00 : f32
      %37 = vector.broadcast %cst_24 : f32 to vector<2x1280xf32>
      %38 = arith.addf %37, %36 : vector<2x1280xf32>
      %cst_25 = arith.constant 5.000000e-01 : f32
      %39 = vector.broadcast %cst_25 : f32 to vector<2x1280xf32>
      %40 = arith.mulf %39, %38 : vector<2x1280xf32>
      %41 = arith.mulf %28, %40 : vector<2x1280xf32>
      %c0_26 = arith.constant 0 : index
      %c0_27 = arith.constant 0 : index
      %42 = vector.load %arg5[%c0_26, %c0_27] : memref<1280x128xf32, #tpu.memory_space<vmem>>, vector<1280x128xf32>
      %cst_28 = arith.constant dense<0.000000e+00> : vector<2x128xf32>
      %43 = tpu.matmul %41, %42, %cst_28 {dimension_numbers = #tpu.dot_dimension_numbers<[1], [0], [0], [1], [0, 0, 1, 1], [], []>} : vector<2x1280xf32>, vector<1280x128xf32>, vector<2x128xf32> -> vector<2x128xf32>
      %c0_29 = arith.constant 0 : index
      %c0_30 = arith.constant 0 : index
      %44 = vector.load %arg6[%c0_29, %c0_30] : memref<1x128xf32, #tpu.memory_space<vmem>>, vector<1x128xf32>
      %45 = vector.broadcast %44 : vector<1x128xf32> to vector<2x128xf32>
      %46 = arith.addf %43, %45 : vector<2x128xf32>
      %c0_31 = arith.constant 0 : index
      %c0_32 = arith.constant 0 : index
      %47 = vector.load %arg9[%c0_31, %c0_32] : memref<2x128xf32, #tpu.memory_space<vmem>>, vector<2x128xf32>
      tpu.vector_store %arg9[%c0_31, %c0_32], %46 {strides = array<i32>} : memref<2x128xf32, #tpu.memory_space<vmem>>, vector<2x128xf32>,
    } else {
    }
    return
  }
  func.func @transform_0(%arg0: i32, %arg1: i32) -> (i32, i32) {
    %c0_i32 = arith.constant 0 : i32
    return %arg0, %arg1 : i32, i32
  }
  func.func @transform_1(%arg0: i32, %arg1: i32) -> (i32, i32) {
    %c0_i32 = arith.constant 0 : i32
    %c0_i32_0 = arith.constant 0 : i32
    %c0_i32_1 = arith.constant 0 : i32
    return %c0_i32, %c0_i32_0 : i32, i32
  }
  func.func @transform_2(%arg0: i32, %arg1: i32) -> (i32, i32) {
    %c0_i32 = arith.constant 0 : i32
    %c0_i32_0 = arith.constant 0 : i32
    %c0_i32_1 = arith.constant 0 : i32
    return %c0_i32, %c0_i32_0 : i32, i32
  }
  func.func @transform_3(%arg0: i32, %arg1: i32) -> (i32, i32) {
    %c0_i32 = arith.constant 0 : i32
    %c0_i32_0 = arith.constant 0 : i32
    %c0_i32_1 = arith.constant 0 : i32
    return %c0_i32, %c0_i32_0 : i32, i32
  }
  func.func @transform_4(%arg0: i32, %arg1: i32) -> (i32, i32) {
    %c0_i32 = arith.constant 0 : i32
    %c0_i32_0 = arith.constant 0 : i32
    %c0_i32_1 = arith.constant 0 : i32
    return %c0_i32, %c0_i32_0 : i32, i32
  }
  func.func @transform_5(%arg0: i32, %arg1: i32) -> (i32, i32) {
    %c0_i32 = arith.constant 0 : i32
    %c0_i32_0 = arith.constant 0 : i32
    %c0_i32_1 = arith.constant 0 : i32
    return %c0_i32, %c0_i32_0 : i32, i32
  }
  func.func @transform_6(%arg0: i32, %arg1: i32) -> (i32, i32) {
    %c0_i32 = arith.constant 0 : i32
    %c0_i32_0 = arith.constant 0 : i32
    %c0_i32_1 = arith.constant 0 : i32
    return %c0_i32, %c0_i32_0 : i32, i32
  }
  func.func @transform_7(%arg0: i32, %arg1: i32) -> (i32, i32) {
    %c0_i32 = arith.constant 0 : i32
    %c0_i32_0 = arith.constant 0 : i32
    return %arg0, %c0_i32 : i32, i32
  }
}

</mosaic_0001>

<bundles_post_ra>
// kernel: tpu_custom_call.1
= control target key start
LH: loop header
LB: loop body
LE: loop exit
PB: predicated region body
PF: predicated region fallthrough
CT: control target
= control target key end

     0   :  { %12 = vsyncpa [#allocation4], 0  ;;  %s1878_s0 = inlined_call_operand.hbm [shape: bf16[8,256], index: 0, kind: input, shape index: {}]   ;;  %s1879_s1 = inlined_call_operand.hbm [shape: f32[128,1280], index: 1, kind: input, shape index: {}]   ;;  %s1880_s2 = inlined_call_operand.hbm [shape: f32[1,1280], index: 2, kind: input, shape index: {}]   ;;  %s1881_s3 = inlined_call_operand.hbm [shape: f32[1280,128], index: 3, kind: input, shape index: {}]   ;;  %s1882_s4 = inlined_call_operand.hbm [shape: f32[1,128], index: 4, kind: input, shape index: {}]   ;;  %s1883_s5 = inlined_call_operand.vmem [shape: f32[2,8], index: 5, kind: input, shape index: {}]   ;;  %s1884_s6 = inlined_call_operand.vmem [shape: f32[8,128], index: 6, kind: input, shape index: {}]   ;;  %s1885_s7 = inlined_call_operand.hbm [shape: f32[2,128], index: 7, kind: output, shape index: {}]  }
   0x1   :  { %13 = vsyncpa [#allocation7], 0 }
   0x2   :  { %14 = vsyncpa [#allocation10], 0 }
   0x3   :  { %15 = vsyncpa [#allocation5], 0  ;;  %s1728_s24 = smov [#allocation6]  }
   0x4   :  { %s31_s25 = sshll.u32 %s1728_s24, 4  ;;  %s32_s25 = int_to_ptr.vmem [resolvable:$true] %s31_s25 }
   0x5   :  { %s1608_s26 = scalar_lea.vmem %s32_s25, 20480  ;;  %p1613_p1 = scmp.lt.s32.totalorder %s32_s25, %s32_s25 }
   0x6   :  { %p1609_p0 = scmp.ne.s32.totalorder %s32_s25, %s1608_s26  ;;  %p1614_p2 = scmp.lt.s32.totalorder %s1608_s26, %s1608_s26 }
   0x8   :  { %p1615_p3 = por %p1614_p2, %p1613_p1 }
   0xa   :  { %p1616_p4 = pnand %p1615_p3, %p1609_p0 }
   0xc   :  { %1619 = shalt.err (!%p1616_p4)
}
   0xd   :  { %s1729_s27 = smov 1280   ;;  %s1730_s28 = smov 80  }
   0xe   :  { %37 = dma.hbm_to_vmem [thread:$0]  %s1879_s1, 20480, %s32_s25, [#allocation7], %s1729_s27, %s1729_s27, %s1730_s28  }
   0xf   :  { %s1731_s8 = smov [#allocation9]  }
  0x10   :  { %s53_s9 = sshll.u32 %s1731_s8, 4  ;;  %s54_s9 = int_to_ptr.vmem [resolvable:$true] %s53_s9 }
  0x11   :  { %s1628_s10 = scalar_lea.vmem %s54_s9, 20480  ;;  %p1633_p6 = scmp.lt.s32.totalorder %s54_s9, %s54_s9 }
  0x12   :  { %p1629_p5 = scmp.ne.s32.totalorder %s54_s9, %s1628_s10  ;;  %p1634_p7 = scmp.lt.s32.totalorder %s1628_s10, %s1628_s10 }
  0x14   :  { %p1635_p8 = por %p1634_p7, %p1633_p6 }
  0x16   :  { %p1636_p9 = pnand %p1635_p8, %p1629_p5 }
  0x18   :  { %1639 = shalt.err (!%p1636_p9)
}
  0x19   :  { %s1732_s11 = smov 128   ;;  %s1733_s12 = smov 8  }
  0x1a   :  { %59 = dma.hbm_to_vmem [thread:$0]  %s1881_s3, 20480, %s54_s9, [#allocation10], %s1732_s11, %s1732_s11, %s1733_s12  }
  0x1b   :  { %s1734_s15 = smov [#allocation3]   ;;  %s1735_s17 = smov [#allocation8]  }
  0x1c   :  { %s22_s16 = sshll.u32 %s1734_s15, 4  ;;  %s44_s1 = sshll.u32 %s1735_s17, 4  ;;  %s23_s16 = int_to_ptr.vmem [resolvable:$true] %s22_s16  ;;  %s45_s1 = int_to_ptr.vmem [resolvable:$true] %s44_s1 }
  0x1d   :  { %s1648_s18 = scalar_lea.vmem %s23_s16, 128  ;;  %p1653_p11 = scmp.lt.s32.totalorder %s23_s16, %s23_s16 }
  0x1e   :  { %p1649_p10 = scmp.ne.s32.totalorder %s23_s16, %s1648_s18  ;;  %p1654_p12 = scmp.lt.s32.totalorder %s1648_s18, %s1648_s18 }
  0x20   :  { %p1655_p13 = por %p1654_p12, %p1653_p11 }
  0x22   :  { %p1656_p0 = pnand %p1655_p13, %p1649_p10 }
  0x24   :  { %1659 = shalt.err (!%p1656_p0)
}
  0x25   :  { %25 = dma.hbm_to_vmem [thread:$0]  %s1878_s0, 128, %s23_s16, [#allocation4]  }
  0x26   :  { %s1668_s21 = scalar_lea.vmem %s45_s1, 160  ;;  %p1673_p2 = scmp.lt.s32.totalorder %s45_s1, %s45_s1 }
  0x27   :  { %p1669_p1 = scmp.ne.s32.totalorder %s45_s1, %s1668_s21  ;;  %p1674_p3 = scmp.lt.s32.totalorder %s1668_s21, %s1668_s21 }
  0x29   :  { %p1675_p4 = por %p1674_p3, %p1673_p2 }
  0x2b   :  { %p1676_p5 = pnand %p1675_p4, %p1669_p1 }
  0x2d   :  { %1679 = shalt.err (!%p1676_p5)
}
  0x2e   :  { %47 = dma.hbm_to_vmem [thread:$0]  %s1880_s2, 160, %s45_s1, [#allocation7]  }
  0x2f   :  { %s1736_s23 = smov [#allocation11]  }
  0x30   :  { %s66_s24 = sshll.u32 %s1736_s23, 4  ;;  %s67_s24 = int_to_ptr.vmem [resolvable:$true] %s66_s24 }
  0x31   :  { %s1688_s25 = scalar_lea.vmem %s67_s24, 16  ;;  %s1692_s26 = scalar_lea.vmem %s67_s24, 32 }
  0x32   :  { %p1689_p6 = scmp.ne.s32.totalorder %s67_s24, %s1688_s25  ;;  %p1693_p7 = scmp.lt.s32.totalorder %s67_s24, %s67_s24 }
  0x33   :  { %p1694_p8 = scmp.lt.s32.totalorder %s1692_s26, %s1688_s25 }
  0x35   :  { %p1695_p9 = por %p1694_p8, %p1693_p7 }
  0x37   :  { %p1696_p10 = pnand %p1695_p9, %p1689_p6 }
  0x39   :  { %1699 = shalt.err (!%p1696_p10)
}
  0x3a   :  { %69 = dma.hbm_to_vmem [thread:$0]  %s1882_s4, 16, %s67_s24, [#allocation10]  }
  0x3b   :  { %1720 = dma.done.wait [#allocation4], 128  }
  0x3c   :  { %1721 = vsyncadd [#allocation4], 4294967168 }
  0x3d   :  { %1722 = dma.done.wait [#allocation7], 20640  }
  0x3e   :  { %1723 = vsyncadd [#allocation7], 4294946656 }
  0x3f   :  { %1724 = dma.done.wait [#allocation10], 20496  }
  0x40   :  { %1725 = vsyncadd [#allocation10], 4294946800  ;;  %v1383_v0 = vld [vmem:[#allocation3] sm:$0xff]   ;;  %v1737_v4 = vmov 0.0   ;;  %vm1738_vm0 = vmmov 0   ;;  %v336_v6 = vld [vmem:[#allocation6 + $0x4b0] sm:$0xff] }
  0x41   :  { %v1384_v1 = vunpack.c.l.bf16 %v1383_v0  ;;  %v1385_v2 = vunpack.c.h.bf16 %v1383_v0  ;;  %1563 = vmatprep.subr.mxu0 %v1737_v4  ;;  %464 = vmatprep.mubr.f32.mxu1 %v1737_v4  ;;  %v337_v5 = vld [vmem:[#allocation6 + $0x4b8] sm:$0xff]  ;;  %v327_v7 = vld [vmem:[#allocation6 + $0x468] sm:$0xff]  ;;  %v326_v8 = vld [vmem:[#allocation6 + $0x460] sm:$0xff]  ;;  %vm112_vm1 = vcmask 64512  }
  0x42   :  { %1565 = vmatprep.mubr.msk.f32.mxu0 %vm1738_vm0, %v1737_v4  ;;  %400 = vmatprep.subr.mxu1 %v337_v5  ;;  %v317_v9 = vld [vmem:[#allocation6 + $0x418] sm:$0xff]  ;;  %v316_v10 = vld [vmem:[#allocation6 + $0x410] sm:$0xff]  ;;  %v307_v11 = vld [vmem:[#allocation6 + $0x3c8] sm:$0xff] }
  0x43   :  { %v98_v3 = vadd.f32 %v1385_v2, %v1384_v1  ;;  %401 = vmatpush1.msra.mxu1 %v336_v6  ;;  %v306_v12 = vld [vmem:[#allocation6 + $0x3c0] sm:$0xff]  ;;  %v297_v13 = vld [vmem:[#allocation6 + $0x378] sm:$0xff]  ;;  %v296_v14 = vld [vmem:[#allocation6 + $0x370] sm:$0xff] }
  0x44   :  { %402 = vmatprep.subr.mxu1 %v327_v7  ;;  %v287_v15 = vld [vmem:[#allocation6 + $0x328] sm:$0xff]  ;;  %v286_v16 = vld [vmem:[#allocation6 + $0x320] sm:$0xff]  ;;  %v277_v17 = vld [vmem:[#allocation6 + $0x2d8] sm:$0xff] }
  0x45   :  { %106 = vadd.xlane.f32.xlu0 %v98_v3  ;;  %403 = vmatpush1.msra.mxu1 %v326_v8  ;;  %v276_v18 = vld [vmem:[#allocation6 + $0x2d0] sm:$0xff]  ;;  %v267_v19 = vld [vmem:[#allocation6 + $0x288] sm:$0xff]  ;;  %v266_v20 = vld [vmem:[#allocation6 + $0x280] sm:$0xff] }
  0x46   :  { %404 = vmatprep.subr.mxu1 %v317_v9  ;;  %v257_v21 = vld [vmem:[#allocation6 + $0x238] sm:$0xff]  ;;  %v256_v22 = vld [vmem:[#allocation6 + $0x230] sm:$0xff]  ;;  %v247_v23 = vld [vmem:[#allocation6 + $0x1e8] sm:$0xff] }
  0x47   :  { %405 = vmatpush1.msra.mxu1 %v316_v10  ;;  %v246_v24 = vld [vmem:[#allocation6 + $0x1e0] sm:$0xff]  ;;  %v237_v25 = vld [vmem:[#allocation6 + $0x198] sm:$0xff]  ;;  %v236_v26 = vld [vmem:[#allocation6 + $0x190] sm:$0xff] }
  0x48   :  { %406 = vmatprep.subr.mxu1 %v307_v11  ;;  %v227_v27 = vld [vmem:[#allocation6 + $0x148] sm:$0xff]  ;;  %v226_v28 = vld [vmem:[#allocation6 + $0x140] sm:$0xff]  ;;  %v217_v29 = vld [vmem:[#allocation6 + $0xf8] sm:$0xff] }
  0x49   :  { %407 = vmatpush1.msra.mxu1 %v306_v12  ;;  %v216_v30 = vld [vmem:[#allocation6 + $0xf0] sm:$0xff]  ;;  %v207_v31 = vld [vmem:[#allocation6 + $0xa8] sm:$0xff]  ;;  %v206_v32 = vld [vmem:[#allocation6 + $0xa0] sm:$0xff] }
  0x4a   :  { %408 = vmatprep.subr.mxu1 %v297_v13  ;;  %v197_v33 = vld [vmem:[#allocation6 + $0x58] sm:$0xff]  ;;  %v196_v34 = vld [vmem:[#allocation6 + $0x50] sm:$0xff]  ;;  %v187_v35 = vld [vmem:[#allocation6 + $0x8] sm:$0xff] }
  0x4b   :  { %409 = vmatpush1.msra.mxu1 %v296_v14  ;;  %v186_v36 = vld [vmem:[#allocation6] sm:$0xff]  ;;  %v110_v38 = vld [vmem:[%s1884_s6] sm:$0xff]  ;;  %v339_v42 = vld [vmem:[#allocation6 + $0x4c8] sm:$0xff] }
  0x4c   :  { %410 = vmatprep.subr.mxu1 %v287_v15  ;;  %v109_v41 = vld [vmem:[%s1883_s5] sm:$0x3]  ;;  %v338_v43 = vld [vmem:[#allocation6 + $0x4c0] sm:$0xff]  ;;  %v328_v45 = vld [vmem:[#allocation6 + $0x470] sm:$0xff]  ;;  %s1739_s5 = smov [#allocation12]  }
  0x4d   :  { %411 = vmatpush1.msra.mxu1 %v286_v16  ;;  %v329_v44 = vld [vmem:[#allocation6 + $0x478] sm:$0xff]  ;;  %v319_v46 = vld [vmem:[#allocation6 + $0x428] sm:$0xff]  ;;  %v318_v47 = vld [vmem:[#allocation6 + $0x420] sm:$0xff]  ;;  %s1369_s6 = sshll.u32 %s1739_s5, 4  ;;  %s1370_s6 = int_to_ptr.vmem [resolvable:$true] %s1369_s6 }
  0x4e   :  { %412 = vmatprep.subr.mxu1 %v277_v17  ;;  %v309_v48 = vld [vmem:[#allocation6 + $0x3d8] sm:$0xff]  ;;  %v308_v49 = vld [vmem:[#allocation6 + $0x3d0] sm:$0xff]  ;;  %v299_v50 = vld [vmem:[#allocation6 + $0x388] sm:$0xff]  ;;  %s1700_s30 = scalar_lea.vmem %s1370_s6, 32  ;;  %p1705_p12 = scmp.lt.s32.totalorder %s1370_s6, %s1370_s6 }
  0x4f   :  { %413 = vmatpush1.msra.mxu1 %v276_v18  ;;  %v298_v51 = vld [vmem:[#allocation6 + $0x380] sm:$0xff]  ;;  %v289_v52 = vld [vmem:[#allocation6 + $0x338] sm:$0xff]  ;;  %v288_v53 = vld [vmem:[#allocation6 + $0x330] sm:$0xff]  ;;  %p1701_p11 = scmp.ne.s32.totalorder %s1370_s6, %s1700_s30  ;;  %p1706_p13 = scmp.lt.s32.totalorder %s1700_s30, %s1700_s30 }
  0x50   :  { %414 = vmatprep.subr.mxu1 %v267_v19  ;;  %v279_v54 = vld [vmem:[#allocation6 + $0x2e8] sm:$0xff]  ;;  %v278_v55 = vld [vmem:[#allocation6 + $0x2e0] sm:$0xff]  ;;  %v269_v56 = vld [vmem:[#allocation6 + $0x298] sm:$0xff] }
  0x51   :  { %415 = vmatpush1.msra.mxu1 %v266_v20  ;;  %v268_v57 = vld [vmem:[#allocation6 + $0x290] sm:$0xff]  ;;  %v259_v58 = vld [vmem:[#allocation6 + $0x248] sm:$0xff]  ;;  %v258_v59 = vld [vmem:[#allocation6 + $0x240] sm:$0xff]  ;;  %p1707_p0 = por %p1706_p13, %p1705_p12 }
  0x52   :  { %416 = vmatprep.subr.mxu1 %v257_v21  ;;  %v249_v60 = vld [vmem:[#allocation6 + $0x1f8] sm:$0xff]  ;;  %v248_v61 = vld [vmem:[#allocation6 + $0x1f0] sm:$0xff]  ;;  %v239_v62 = vld [vmem:[#allocation6 + $0x1a8] sm:$0xff] }
  0x53   :  { %417 = vmatpush1.msra.mxu1 %v256_v22  ;;  %v238_v63 = vld [vmem:[#allocation6 + $0x1a0] sm:$0xff]  ;;  %v229_v0 = vld [vmem:[#allocation6 + $0x158] sm:$0xff]  ;;  %v228_v1 = vld [vmem:[#allocation6 + $0x150] sm:$0xff]  ;;  %p1708_p1 = pnand %p1707_p0, %p1701_p11 }
  0x54   :  { %418 = vmatprep.subr.mxu1 %v247_v23  ;;  %v219_v2 = vld [vmem:[#allocation6 + $0x108] sm:$0xff]  ;;  %v218_v3 = vld [vmem:[#allocation6 + $0x100] sm:$0xff]  ;;  %v209_v5 = vld [vmem:[#allocation6 + $0xb8] sm:$0xff] }
  0x55   :  { %419 = vmatpush1.msra.mxu1 %v246_v24  ;;  %v208_v6 = vld [vmem:[#allocation6 + $0xb0] sm:$0xff]  ;;  %v199_v7 = vld [vmem:[#allocation6 + $0x68] sm:$0xff]  ;;  %v198_v8 = vld [vmem:[#allocation6 + $0x60] sm:$0xff] }
  0x56   :  { %420 = vmatprep.subr.mxu1 %v237_v25  ;;  %v189_v9 = vld [vmem:[#allocation6 + $0x18] sm:$0xff]  ;;  %v188_v10 = vld [vmem:[#allocation6 + $0x10] sm:$0xff]  ;;  %v343_v12 = vld [vmem:[#allocation6 + $0x4e8] sm:$0xff] }
  0x57   :  { %421 = vmatpush1.msra.mxu1 %v236_v26  ;;  %v341_v11 = vld [vmem:[#allocation6 + $0x4d8] sm:$0xff]  ;;  %v340_v13 = vld [vmem:[#allocation6 + $0x4d0] sm:$0xff]  ;;  %v342_v14 = vld [vmem:[#allocation6 + $0x4e0] sm:$0xff] }
  0x58   :  { %422 = vmatprep.subr.mxu1 %v227_v27  ;;  %v331_v16 = vld [vmem:[#allocation6 + $0x488] sm:$0xff]  ;;  %v333_v17 = vld [vmem:[#allocation6 + $0x498] sm:$0xff]  ;;  %v330_v18 = vld [vmem:[#allocation6 + $0x480] sm:$0xff] }
  0x59   :  { %423 = vmatpush1.msra.mxu1 %v226_v28  ;;  %v332_v19 = vld [vmem:[#allocation6 + $0x490] sm:$0xff]  ;;  %v321_v21 = vld [vmem:[#allocation6 + $0x438] sm:$0xff]  ;;  %v323_v22 = vld [vmem:[#allocation6 + $0x448] sm:$0xff] }
  0x5a   :  { %424 = vmatprep.subr.mxu1 %v217_v29  ;;  %v320_v23 = vld [vmem:[#allocation6 + $0x430] sm:$0xff]  ;;  %v322_v24 = vld [vmem:[#allocation6 + $0x440] sm:$0xff]  ;;  %v311_v25 = vld [vmem:[#allocation6 + $0x3e8] sm:$0xff] }
  0x5b   :  { %425 = vmatpush1.msra.mxu1 %v216_v30  ;;  %v313_v26 = vld [vmem:[#allocation6 + $0x3f8] sm:$0xff]  ;;  %v310_v27 = vld [vmem:[#allocation6 + $0x3e0] sm:$0xff]  ;;  %v312_v28 = vld [vmem:[#allocation6 + $0x3f0] sm:$0xff] }
  0x5c   :  { %426 = vmatprep.subr.mxu1 %v207_v31  ;;  %v301_v29 = vld [vmem:[#allocation6 + $0x398] sm:$0xff]  ;;  %v303_v30 = vld [vmem:[#allocation6 + $0x3a8] sm:$0xff]  ;;  %v300_v31 = vld [vmem:[#allocation6 + $0x390] sm:$0xff] }
  0x5d   :  { %427 = vmatpush1.msra.mxu1 %v206_v32  ;;  %v302_v32 = vld [vmem:[#allocation6 + $0x3a0] sm:$0xff] }
  0x5e   :  { %428 = vmatprep.subr.mxu1 %v197_v33  ;;  %v291_v33 = vld [vmem:[#allocation6 + $0x348] sm:$0xff] }
  0x5f   :  { %429 = vmatpush1.msra.mxu1 %v196_v34  ;;  %v293_v34 = vld [vmem:[#allocation6 + $0x358] sm:$0xff] }
  0x60   :  { %430 = vmatprep.subr.mxu1 %v187_v35  ;;  %v290_v35 = vld [vmem:[#allocation6 + $0x340] sm:$0xff] }
  0x61   :  { %431 = vmatpush1.msra.mxu1 %v186_v36  ;;  %v292_v36 = vld [vmem:[#allocation6 + $0x350] sm:$0xff] }
  0x62   :  { %542 = vmatprep.subr.mxu1 %v341_v11  ;;  %v193_v11 = vld [vmem:[#allocation6 + $0x38] sm:$0xff] }
  0xce   :  { %v107_v37 = vpop.xlane.xlu0 %106 }
  0xcf   :  { %v108_v39 = vmul.f32 0.00390625, %v107_v37  ;;  %v281_v37 = vld [vmem:[#allocation6 + $0x2f8] sm:$0xff] }
  0xd1   :  { %v111_v40 = vmul.f32 %v110_v38, %v108_v39  ;;  %v283_v38 = vld [vmem:[#allocation6 + $0x308] sm:$0xff]  ;;  %v280_v39 = vld [vmem:[#allocation6 + $0x2f0] sm:$0xff] }
  0xd3   :  { %1564 = vmatpush3.msra.mxu0 %v111_v40  ;;  %v282_v40 = vld [vmem:[#allocation6 + $0x300] sm:$0xff] }
  0xd4   :  { %1566 = vmatmul.mubr.msk.f32.vlgmr.msra.gmra.mxu0 %vm112_vm1, %v109_v41  ;;  %471 = vmatprep.subr.mxu0 %v339_v42  ;;  %v271_v41 = vld [vmem:[#allocation6 + $0x2a8] sm:$0xff]  ;;  %v273_v42 = vld [vmem:[#allocation6 + $0x2b8] sm:$0xff] }
  0xd5   :  { %472 = vmatpush1.msra.mxu0 %v338_v43  ;;  %535 = vmatprep.mubr.f32.mxu0 %v1737_v4  ;;  %v270_v43 = vld [vmem:[#allocation6 + $0x2a0] sm:$0xff] }
  0xd6   :  { %473 = vmatprep.subr.mxu0 %v329_v44  ;;  %v272_v44 = vld [vmem:[#allocation6 + $0x2b0] sm:$0xff] }
  0xd7   :  { %474 = vmatpush1.msra.mxu0 %v328_v45  ;;  %v261_v45 = vld [vmem:[#allocation6 + $0x258] sm:$0xff] }
  0xd8   :  { %475 = vmatprep.subr.mxu0 %v319_v46  ;;  %v263_v46 = vld [vmem:[#allocation6 + $0x268] sm:$0xff] }
  0xd9   :  { %476 = vmatpush1.msra.mxu0 %v318_v47  ;;  %v260_v47 = vld [vmem:[#allocation6 + $0x250] sm:$0xff] }
  0xda   :  { %477 = vmatprep.subr.mxu0 %v309_v48  ;;  %v262_v48 = vld [vmem:[#allocation6 + $0x260] sm:$0xff] }
  0xdb   :  { %478 = vmatpush1.msra.mxu0 %v308_v49  ;;  %v251_v49 = vld [vmem:[#allocation6 + $0x208] sm:$0xff] }
  0xdc   :  { %479 = vmatprep.subr.mxu0 %v299_v50  ;;  %v253_v50 = vld [vmem:[#allocation6 + $0x218] sm:$0xff] }
  0xdd   :  { %480 = vmatpush1.msra.mxu0 %v298_v51  ;;  %v250_v51 = vld [vmem:[#allocation6 + $0x200] sm:$0xff] }
  0xde   :  { %481 = vmatprep.subr.mxu0 %v289_v52  ;;  %v252_v52 = vld [vmem:[#allocation6 + $0x210] sm:$0xff] }
  0xdf   :  { %482 = vmatpush1.msra.mxu0 %v288_v53  ;;  %v241_v53 = vld [vmem:[#allocation6 + $0x1b8] sm:$0xff] }
  0xe0   :  { %483 = vmatprep.subr.mxu0 %v279_v54  ;;  %v243_v54 = vld [vmem:[#allocation6 + $0x1c8] sm:$0xff] }
  0xe1   :  { %484 = vmatpush1.msra.mxu0 %v278_v55  ;;  %v240_v55 = vld [vmem:[#allocation6 + $0x1b0] sm:$0xff] }
  0xe2   :  { %485 = vmatprep.subr.mxu0 %v269_v56  ;;  %v242_v56 = vld [vmem:[#allocation6 + $0x1c0] sm:$0xff] }
  0xe3   :  { %486 = vmatpush1.msra.mxu0 %v268_v57  ;;  %v231_v57 = vld [vmem:[#allocation6 + $0x168] sm:$0xff] }
  0xe4   :  { %487 = vmatprep.subr.mxu0 %v259_v58  ;;  %v233_v58 = vld [vmem:[#allocation6 + $0x178] sm:$0xff] }
  0xe5   :  { %488 = vmatpush1.msra.mxu0 %v258_v59  ;;  %v230_v59 = vld [vmem:[#allocation6 + $0x160] sm:$0xff] }
  0xe6   :  { %489 = vmatprep.subr.mxu0 %v249_v60  ;;  %v232_v60 = vld [vmem:[#allocation6 + $0x170] sm:$0xff] }
  0xe7   :  { %490 = vmatpush1.msra.mxu0 %v248_v61  ;;  %v221_v61 = vld [vmem:[#allocation6 + $0x118] sm:$0xff] }
  0xe8   :  { %491 = vmatprep.subr.mxu0 %v239_v62  ;;  %v223_v62 = vld [vmem:[#allocation6 + $0x128] sm:$0xff] }
  0xe9   :  { %492 = vmatpush1.msra.mxu0 %v238_v63  ;;  %v220_v63 = vld [vmem:[#allocation6 + $0x110] sm:$0xff] }
  0xea   :  { %493 = vmatprep.subr.mxu0 %v229_v0  ;;  %v222_v0 = vld [vmem:[#allocation6 + $0x120] sm:$0xff] }
  0xeb   :  { %494 = vmatpush1.msra.mxu0 %v228_v1  ;;  %v211_v1 = vld [vmem:[#allocation6 + $0xc8] sm:$0xff] }
  0xec   :  { %495 = vmatprep.subr.mxu0 %v219_v2  ;;  %v213_v2 = vld [vmem:[#allocation6 + $0xd8] sm:$0xff] }
  0xed   :  { %496 = vmatpush1.msra.mxu0 %v218_v3  ;;  %v210_v3 = vld [vmem:[#allocation6 + $0xc0] sm:$0xff] }
  0xee   :  { %497 = vmatprep.subr.mxu0 %v209_v5  ;;  %v212_v5 = vld [vmem:[#allocation6 + $0xd0] sm:$0xff] }
  0xef   :  { %498 = vmatpush1.msra.mxu0 %v208_v6  ;;  %v201_v6 = vld [vmem:[#allocation6 + $0x78] sm:$0xff] }
  0xf0   :  { %499 = vmatprep.subr.mxu0 %v199_v7  ;;  %v203_v7 = vld [vmem:[#allocation6 + $0x88] sm:$0xff] }
  0xf1   :  { %500 = vmatpush1.msra.mxu0 %v198_v8  ;;  %v200_v8 = vld [vmem:[#allocation6 + $0x70] sm:$0xff] }
  0xf2   :  { %501 = vmatprep.subr.mxu0 %v189_v9  ;;  %v202_v9 = vld [vmem:[#allocation6 + $0x80] sm:$0xff] }
  0xf3   :  { %502 = vmatpush1.msra.mxu0 %v188_v10  ;;  %v191_v10 = vld [vmem:[#allocation6 + $0x28] sm:$0xff] }
  0xf4   :  { %613 = vmatprep.subr.mxu0 %v343_v12  ;;  %v190_v12 = vld [vmem:[#allocation6 + $0x20] sm:$0xff] }
 0x194   :  { %v1805_v15 = vpop.f32.mrf.mxu0 }
 0x195   :  { %465 = vmatmul.mubr.f32.vlgmr.msra.gmra.mxu1 %v1805_v15  ;;  %536 = vmatmul.mubr.f32.vlgmr.msra.gmra.mxu0 %v1805_v15 }
 0x196   :  { %543 = vmatpush1.msra.mxu1 %v340_v13  ;;  %614 = vmatpush1.msra.mxu0 %v342_v14  ;;  %v1567_v20 = vpop.f32.mrf.mxu0  ;;  %v192_v13 = vld [vmem:[#allocation6 + $0x30] sm:$0xff]  ;;  %v345_v14 = vld [vmem:[#allocation6 + $0x4f8] sm:$0xff] }
 0x197   :  { %544 = vmatprep.subr.mxu1 %v331_v16  ;;  %615 = vmatprep.subr.mxu0 %v333_v17  ;;  %v344_v16 = vld [vmem:[#allocation6 + $0x4f0] sm:$0xff]  ;;  %v335_v17 = vld [vmem:[#allocation6 + $0x4a8] sm:$0xff] }
 0x198   :  { %545 = vmatpush1.msra.mxu1 %v330_v18  ;;  %616 = vmatpush1.msra.mxu0 %v332_v19  ;;  %v334_v18 = vld [vmem:[#allocation6 + $0x4a0] sm:$0xff]  ;;  %v325_v19 = vld [vmem:[#allocation6 + $0x458] sm:$0xff]  ;;  %v324_v20 = vld [vmem:[#allocation6 + $0x450] sm:$0xff] }
 0x199   :  { %546 = vmatprep.subr.mxu1 %v321_v21  ;;  %617 = vmatprep.subr.mxu0 %v323_v22  ;;  %v315_v21 = vld [vmem:[#allocation6 + $0x408] sm:$0xff]  ;;  %v314_v22 = vld [vmem:[#allocation6 + $0x400] sm:$0xff] }
 0x19a   :  { %547 = vmatpush1.msra.mxu1 %v320_v23  ;;  %618 = vmatpush1.msra.mxu0 %v322_v24  ;;  %v305_v23 = vld [vmem:[#allocation6 + $0x3b8] sm:$0xff]  ;;  %v304_v24 = vld [vmem:[#allocation6 + $0x3b0] sm:$0xff] }
 0x19b   :  { %548 = vmatprep.subr.mxu1 %v311_v25  ;;  %619 = vmatprep.subr.mxu0 %v313_v26  ;;  %v295_v25 = vld [vmem:[#allocation6 + $0x368] sm:$0xff]  ;;  %v294_v26 = vld [vmem:[#allocation6 + $0x360] sm:$0xff] }
 0x19c   :  { %549 = vmatpush1.msra.mxu1 %v310_v27  ;;  %620 = vmatpush1.msra.mxu0 %v312_v28  ;;  %v285_v27 = vld [vmem:[#allocation6 + $0x318] sm:$0xff]  ;;  %v275_v28 = vld [vmem:[#allocation6 + $0x2c8] sm:$0xff] }
 0x19d   :  { %550 = vmatprep.subr.mxu1 %v301_v29  ;;  %621 = vmatprep.subr.mxu0 %v303_v30  ;;  %v274_v29 = vld [vmem:[#allocation6 + $0x2c0] sm:$0xff]  ;;  %v265_v30 = vld [vmem:[#allocation6 + $0x278] sm:$0xff] }
 0x19e   :  { %551 = vmatpush1.msra.mxu1 %v300_v31  ;;  %622 = vmatpush1.msra.mxu0 %v302_v32  ;;  %v264_v31 = vld [vmem:[#allocation6 + $0x270] sm:$0xff]  ;;  %v255_v32 = vld [vmem:[#allocation6 + $0x228] sm:$0xff] }
 0x19f   :  { %552 = vmatprep.subr.mxu1 %v291_v33  ;;  %623 = vmatprep.subr.mxu0 %v293_v34  ;;  %v254_v33 = vld [vmem:[#allocation6 + $0x220] sm:$0xff]  ;;  %v245_v34 = vld [vmem:[#allocation6 + $0x1d8] sm:$0xff] }
 0x1a0   :  { %553 = vmatpush1.msra.mxu1 %v290_v35  ;;  %624 = vmatpush1.msra.mxu0 %v292_v36  ;;  %v244_v35 = vld [vmem:[#allocation6 + $0x1d0] sm:$0xff]  ;;  %v235_v36 = vld [vmem:[#allocation6 + $0x188] sm:$0xff] }
 0x1a1   :  { %554 = vmatprep.subr.mxu1 %v281_v37  ;;  %625 = vmatprep.subr.mxu0 %v283_v38  ;;  %v234_v37 = vld [vmem:[#allocation6 + $0x180] sm:$0xff]  ;;  %v225_v38 = vld [vmem:[#allocation6 + $0x138] sm:$0xff] }
 0x1a2   :  { %555 = vmatpush1.msra.mxu1 %v280_v39  ;;  %626 = vmatpush1.msra.mxu0 %v282_v40  ;;  %v224_v39 = vld [vmem:[#allocation6 + $0x130] sm:$0xff]  ;;  %v215_v40 = vld [vmem:[#allocation6 + $0xe8] sm:$0xff] }
 0x1a3   :  { %556 = vmatprep.subr.mxu1 %v271_v41  ;;  %627 = vmatprep.subr.mxu0 %v273_v42  ;;  %v214_v41 = vld [vmem:[#allocation6 + $0xe0] sm:$0xff]  ;;  %v205_v42 = vld [vmem:[#allocation6 + $0x98] sm:$0xff] }
 0x1a4   :  { %557 = vmatpush1.msra.mxu1 %v270_v43  ;;  %628 = vmatpush1.msra.mxu0 %v272_v44  ;;  %v204_v43 = vld [vmem:[#allocation6 + $0x90] sm:$0xff]  ;;  %v195_v44 = vld [vmem:[#allocation6 + $0x48] sm:$0xff] }
 0x1a5   :  { %558 = vmatprep.subr.mxu1 %v261_v45  ;;  %629 = vmatprep.subr.mxu0 %v263_v46  ;;  %v194_v45 = vld [vmem:[#allocation6 + $0x40] sm:$0xff] }
 0x1a6   :  { %559 = vmatpush1.msra.mxu1 %v260_v47  ;;  %630 = vmatpush1.msra.mxu0 %v262_v48  ;;  %v876_v46 = vld [vmem:[#allocation9 + $0xf8] sm:$0xff] }
 0x1a7   :  { %560 = vmatprep.subr.mxu1 %v251_v49  ;;  %631 = vmatprep.subr.mxu0 %v253_v50  ;;  %v908_v47 = vld [vmem:[#allocation9 + $0x1f8] sm:$0xff]  ;;  %v875_v50 = vld [vmem:[#allocation9 + $0xf0] sm:$0xff] }
 0x1a8   :  { %561 = vmatpush1.msra.mxu1 %v250_v51  ;;  %632 = vmatpush1.msra.mxu0 %v252_v52  ;;  %v860_v48 = vld [vmem:[#allocation9 + $0x78] sm:$0xff]  ;;  %v907_v51 = vld [vmem:[#allocation9 + $0x1f0] sm:$0xff] }
 0x1a9   :  { %562 = vmatprep.subr.mxu1 %v241_v53  ;;  %633 = vmatprep.subr.mxu0 %v243_v54  ;;  %v892_v49 = vld [vmem:[#allocation9 + $0x178] sm:$0xff]  ;;  %v859_v52 = vld [vmem:[#allocation9 + $0x70] sm:$0xff]  ;;  %v874_v54 = vld [vmem:[#allocation9 + $0xe8] sm:$0xff] }
 0x1aa   :  { %563 = vmatpush1.msra.mxu1 %v240_v55  ;;  %634 = vmatpush1.msra.mxu0 %v242_v56  ;;  %v891_v53 = vld [vmem:[#allocation9 + $0x170] sm:$0xff]  ;;  %v906_v55 = vld [vmem:[#allocation9 + $0x1e8] sm:$0xff] }
 0x1ab   :  { %564 = vmatprep.subr.mxu1 %v231_v57  ;;  %635 = vmatprep.subr.mxu0 %v233_v58  ;;  %v890_v56 = vld [vmem:[#allocation9 + $0x168] sm:$0xff]  ;;  %v873_v57 = vld [vmem:[#allocation9 + $0xe0] sm:$0xff] }
 0x1ac   :  { %565 = vmatpush1.msra.mxu1 %v230_v59  ;;  %636 = vmatpush1.msra.mxu0 %v232_v60  ;;  %v905_v58 = vld [vmem:[#allocation9 + $0x1e0] sm:$0xff] }
 0x1ad   :  { %566 = vmatprep.subr.mxu1 %v221_v61  ;;  %637 = vmatprep.subr.mxu0 %v223_v62  ;;  %v857_v59 = vld [vmem:[#allocation9 + $0x60] sm:$0xff]  ;;  %v872_v61 = vld [vmem:[#allocation9 + $0xd8] sm:$0xff] }
 0x1ae   :  { %567 = vmatpush1.msra.mxu1 %v220_v63  ;;  %638 = vmatpush1.msra.mxu0 %v222_v0  ;;  %v889_v60 = vld [vmem:[#allocation9 + $0x160] sm:$0xff]  ;;  %v904_v62 = vld [vmem:[#allocation9 + $0x1d8] sm:$0xff] }
 0x1af   :  { %568 = vmatprep.subr.mxu1 %v211_v1  ;;  %639 = vmatprep.subr.mxu0 %v213_v2  ;;  %v856_v63 = vld [vmem:[#allocation9 + $0x58] sm:$0xff]  ;;  %v871_v1 = vld [vmem:[#allocation9 + $0xd0] sm:$0xff] }
 0x1b0   :  { %569 = vmatpush1.msra.mxu1 %v210_v3  ;;  %640 = vmatpush1.msra.mxu0 %v212_v5  ;;  %v888_v0 = vld [vmem:[#allocation9 + $0x158] sm:$0xff]  ;;  %v903_v2 = vld [vmem:[#allocation9 + $0x1d0] sm:$0xff] }
 0x1b1   :  { %570 = vmatprep.subr.mxu1 %v201_v6  ;;  %641 = vmatprep.subr.mxu0 %v203_v7  ;;  %v855_v3 = vld [vmem:[#allocation9 + $0x50] sm:$0xff]  ;;  %v870_v6 = vld [vmem:[#allocation9 + $0xc8] sm:$0xff] }
 0x1b2   :  { %571 = vmatpush1.msra.mxu1 %v200_v8  ;;  %642 = vmatpush1.msra.mxu0 %v202_v9  ;;  %v887_v5 = vld [vmem:[#allocation9 + $0x150] sm:$0xff]  ;;  %v902_v7 = vld [vmem:[#allocation9 + $0x1c8] sm:$0xff] }
 0x1b3   :  { %572 = vmatprep.subr.mxu1 %v191_v10  ;;  %643 = vmatprep.subr.mxu0 %v193_v11  ;;  %v854_v8 = vld [vmem:[#allocation9 + $0x48] sm:$0xff]  ;;  %v869_v10 = vld [vmem:[#allocation9 + $0xc0] sm:$0xff] }
 0x1b4   :  { %573 = vmatpush1.msra.mxu1 %v190_v12  ;;  %606 = vmatprep.mubr.f32.mxu1 %v1737_v4  ;;  %v886_v9 = vld [vmem:[#allocation9 + $0x148] sm:$0xff]  ;;  %v901_v11 = vld [vmem:[#allocation9 + $0x1c0] sm:$0xff] }
 0x1b5   :  { %644 = vmatpush1.msra.mxu0 %v192_v13  ;;  %677 = vmatprep.mubr.f32.mxu0 %v1737_v4  ;;  %v853_v12 = vld [vmem:[#allocation9 + $0x40] sm:$0xff] }
 0x1b6   :  { %607 = vmatmul.mubr.f32.vlgmr.msra.gmra.mxu1 %v1805_v15  ;;  %678 = vmatmul.mubr.f32.vlgmr.msra.gmra.mxu0 %v1805_v15  ;;  %v885_v13 = vld [vmem:[#allocation9 + $0x140] sm:$0xff] }
 0x1b7   :  { %684 = vmatprep.subr.mxu1 %v345_v14  ;;  %748 = vmatprep.mubr.f32.mxu1 %v1737_v4  ;;  %v284_v4 = vld [vmem:[#allocation6 + $0x310] sm:$0xff]  ;;  %v868_v14 = vld [vmem:[#allocation9 + $0xb8] sm:$0xff] }
 0x1b8   :  { %685 = vmatpush1.msra.mxu1 %v344_v16  ;;  %1388 = vmatprep.subr.mxu0 %v876_v46  ;;  %v900_v16 = vld [vmem:[#allocation9 + $0x1b8] sm:$0xff] }
 0x1b9   :  { %686 = vmatprep.subr.mxu1 %v335_v17  ;;  %1389 = vmatpush3.msra.mxu0 %v860_v48  ;;  %v852_v17 = vld [vmem:[#allocation9 + $0x38] sm:$0xff]  ;;  %v350_v48 = vlaneseq }
 0x1ba   :  { %687 = vmatpush1.msra.mxu1 %v334_v18  ;;  %1390 = vmatprep.subr.mxu0 %v875_v50  ;;  %v884_v18 = vld [vmem:[#allocation9 + $0x138] sm:$0xff] }
 0x1bb   :  { %688 = vmatprep.subr.mxu1 %v325_v19  ;;  %1391 = vmatpush3.msra.mxu0 %v859_v52  ;;  %v867_v19 = vld [vmem:[#allocation9 + $0xb0] sm:$0xff]  ;;  %v940_v46 = vld [vmem:[#allocation9 + $0x2f8] sm:$0xff] }
 0x1bc   :  { %689 = vmatpush1.msra.mxu1 %v324_v20  ;;  %1392 = vmatprep.subr.mxu0 %v874_v54  ;;  %v899_v20 = vld [vmem:[#allocation9 + $0x1b0] sm:$0xff] }
 0x1bd   :  { %690 = vmatprep.subr.mxu1 %v315_v21  ;;  %v851_v21 = vld [vmem:[#allocation9 + $0x30] sm:$0xff] }
 0x1be   :  { %691 = vmatpush1.msra.mxu1 %v314_v22  ;;  %v883_v22 = vld [vmem:[#allocation9 + $0x130] sm:$0xff] }
 0x1bf   :  { %692 = vmatprep.subr.mxu1 %v305_v23  ;;  %v866_v23 = vld [vmem:[#allocation9 + $0xa8] sm:$0xff]  ;;  %v346_v52 = vld [vmem:[#allocation8] sm:$0xff] }
 0x1c0   :  { %693 = vmatpush1.msra.mxu1 %v304_v24  ;;  %v898_v24 = vld [vmem:[#allocation9 + $0x1a8] sm:$0xff] }
 0x1c1   :  { %694 = vmatprep.subr.mxu1 %v295_v25  ;;  %v850_v25 = vld [vmem:[#allocation9 + $0x28] sm:$0xff] }
 0x1c2   :  { %695 = vmatpush1.msra.mxu1 %v294_v26  ;;  %v882_v26 = vld [vmem:[#allocation9 + $0x128] sm:$0xff] }
 0x1c3   :  { %696 = vmatprep.subr.mxu1 %v285_v27  ;;  %v865_v27 = vld [vmem:[#allocation9 + $0xa0] sm:$0xff] }
 0x1c4   :  { %697 = vmatpush1.msra.mxu1 %v284_v4  ;;  %v897_v4 = vld [vmem:[#allocation9 + $0x1a0] sm:$0xff] }
 0x1c5   :  { %698 = vmatprep.subr.mxu1 %v275_v28  ;;  %v849_v28 = vld [vmem:[#allocation9 + $0x20] sm:$0xff] }
 0x1c6   :  { %699 = vmatpush1.msra.mxu1 %v274_v29  ;;  %v881_v29 = vld [vmem:[#allocation9 + $0x120] sm:$0xff] }
 0x1c7   :  { %700 = vmatprep.subr.mxu1 %v265_v30  ;;  %v864_v30 = vld [vmem:[#allocation9 + $0x98] sm:$0xff] }
 0x1c8   :  { %701 = vmatpush1.msra.mxu1 %v264_v31  ;;  %v896_v31 = vld [vmem:[#allocation9 + $0x198] sm:$0xff] }
 0x1c9   :  { %702 = vmatprep.subr.mxu1 %v255_v32  ;;  %v848_v32 = vld [vmem:[#allocation9 + $0x18] sm:$0xff] }
 0x1ca   :  { %703 = vmatpush1.msra.mxu1 %v254_v33  ;;  %v880_v33 = vld [vmem:[#allocation9 + $0x118] sm:$0xff] }
 0x1cb   :  { %704 = vmatprep.subr.mxu1 %v245_v34  ;;  %v863_v34 = vld [vmem:[#allocation9 + $0x90] sm:$0xff] }
 0x1cc   :  { %705 = vmatpush1.msra.mxu1 %v244_v35  ;;  %v895_v35 = vld [vmem:[#allocation9 + $0x190] sm:$0xff] }
 0x1cd   :  { %706 = vmatprep.subr.mxu1 %v235_v36  ;;  %v847_v36 = vld [vmem:[#allocation9 + $0x10] sm:$0xff] }
 0x1ce   :  { %707 = vmatpush1.msra.mxu1 %v234_v37  ;;  %v879_v37 = vld [vmem:[#allocation9 + $0x110] sm:$0xff] }
 0x1cf   :  { %708 = vmatprep.subr.mxu1 %v225_v38  ;;  %v862_v38 = vld [vmem:[#allocation9 + $0x88] sm:$0xff] }
 0x1d0   :  { %709 = vmatpush1.msra.mxu1 %v224_v39  ;;  %v894_v39 = vld [vmem:[#allocation9 + $0x188] sm:$0xff] }
 0x1d1   :  { %710 = vmatprep.subr.mxu1 %v215_v40  ;;  %v846_v40 = vld [vmem:[#allocation9 + $0x8] sm:$0xff] }
 0x1d2   :  { %711 = vmatpush1.msra.mxu1 %v214_v41  ;;  %v878_v41 = vld [vmem:[#allocation9 + $0x108] sm:$0xff] }
 0x1d3   :  { %712 = vmatprep.subr.mxu1 %v205_v42  ;;  %v861_v42 = vld [vmem:[#allocation9 + $0x80] sm:$0xff] }
 0x1d4   :  { %713 = vmatpush1.msra.mxu1 %v204_v43  ;;  %v893_v43 = vld [vmem:[#allocation9 + $0x180] sm:$0xff] }
 0x1d5   :  { %714 = vmatprep.subr.mxu1 %v195_v44  ;;  %v845_v44 = vld [vmem:[#allocation9] sm:$0xff] }
 0x1d6   :  { %715 = vmatpush1.msra.mxu1 %v194_v45  ;;  %v877_v45 = vld [vmem:[#allocation9 + $0x100] sm:$0xff] }
 0x1d7   :  { %749 = vmatmul.mubr.f32.vlgmr.msra.gmra.mxu1 %v1805_v15  ;;  %1423 = vmatprep.subr.mxu1 %v908_v47  ;;  %v858_v15 = vld [vmem:[#allocation9 + $0x68] sm:$0xff]  ;;  %v972_v47 = vld [vmem:[#allocation9 + $0x3f8] sm:$0xff] }
 0x1d8   :  { %1424 = vmatpush3.msra.mxu1 %v892_v49  ;;  %1393 = vmatpush3.msra.mxu0 %v858_v15  ;;  %v1815_v49 = vshrl.u32 %v350_v48, 7 }
 0x1d9   :  { %1425 = vmatprep.subr.mxu1 %v907_v51  ;;  %1394 = vmatprep.subr.mxu0 %v873_v57 }
 0x1da   :  { %1426 = vmatpush3.msra.mxu1 %v891_v53  ;;  %1395 = vmatpush3.msra.mxu0 %v857_v59  ;;  %v352_v50 = vsub.s32 0, %v1815_v49  ;;  %v360_v51 = vsub.s32 2, %v1815_v49  ;;  %v356_v53 = vsub.s32 1, %v1815_v49  ;;  %v364_v54 = vsub.s32 3, %v1815_v49 }
 0x1db   :  { %1427 = vmatprep.subr.mxu1 %v906_v55  ;;  %1396 = vmatprep.subr.mxu0 %v872_v61 }
 0x1dc   :  { %1428 = vmatpush3.msra.mxu1 %v890_v56  ;;  %1397 = vmatpush3.msra.mxu0 %v856_v63  ;;  %v353_v55 = vrot.slane %v346_v52, %v352_v50  ;;  %v361_v15 = vrot.slane %v346_v52, %v360_v51  ;;  %v357_v56 = vrot.slane %v346_v52, %v356_v53 }
 0x1dd   :  { %1429 = vmatprep.subr.mxu1 %v905_v58  ;;  %1398 = vmatprep.subr.mxu0 %v871_v1  ;;  %v365_v57 = vrot.slane %v346_v52, %v364_v54 }
 0x1de   :  { %1430 = vmatpush3.msra.mxu1 %v889_v60  ;;  %1399 = vmatpush3.msra.mxu0 %v855_v3 }
 0x1df   :  { %1431 = vmatprep.subr.mxu1 %v904_v62  ;;  %1400 = vmatprep.subr.mxu0 %v870_v6 }
 0x1e0   :  { %1432 = vmatpush3.msra.mxu1 %v888_v0  ;;  %1401 = vmatpush3.msra.mxu0 %v854_v8 }
 0x1e1   :  { %1433 = vmatprep.subr.mxu1 %v903_v2  ;;  %1402 = vmatprep.subr.mxu0 %v869_v10 }
 0x1e2   :  { %1434 = vmatpush3.msra.mxu1 %v887_v5  ;;  %1403 = vmatpush3.msra.mxu0 %v853_v12 }
 0x1e3   :  { %1435 = vmatprep.subr.mxu1 %v902_v7  ;;  %1404 = vmatprep.subr.mxu0 %v868_v14 }
 0x1e4   :  { %1436 = vmatpush3.msra.mxu1 %v886_v9  ;;  %1405 = vmatpush3.msra.mxu0 %v852_v17 }
 0x1e5   :  { %1437 = vmatprep.subr.mxu1 %v901_v11  ;;  %1406 = vmatprep.subr.mxu0 %v867_v19 }
 0x1e6   :  { %1438 = vmatpush3.msra.mxu1 %v885_v13  ;;  %1407 = vmatpush3.msra.mxu0 %v851_v21 }
 0x1e7   :  { %1439 = vmatprep.subr.mxu1 %v900_v16  ;;  %1408 = vmatprep.subr.mxu0 %v866_v23 }
 0x1e8   :  { %1440 = vmatpush3.msra.mxu1 %v884_v18  ;;  %1409 = vmatpush3.msra.mxu0 %v850_v25  ;;  %v368_v25 = vsub.s32 4, %v1815_v49 }
 0x1e9   :  { %1441 = vmatprep.subr.mxu1 %v899_v20  ;;  %1410 = vmatprep.subr.mxu0 %v865_v27 }
 0x1ea   :  { %1442 = vmatpush3.msra.mxu1 %v883_v22  ;;  %1411 = vmatpush3.msra.mxu0 %v849_v28 }
 0x1eb   :  { %1443 = vmatprep.subr.mxu1 %v898_v24  ;;  %1412 = vmatprep.subr.mxu0 %v864_v30  ;;  %v380_v30 = vsub.s32 7, %v1815_v49 }
 0x1ec   :  { %1444 = vmatpush3.msra.mxu1 %v882_v26  ;;  %1413 = vmatpush3.msra.mxu0 %v848_v32  ;;  %v376_v26 = vsub.s32 6, %v1815_v49 }
 0x1ed   :  { %1445 = vmatprep.subr.mxu1 %v897_v4  ;;  %1414 = vmatprep.subr.mxu0 %v863_v34  ;;  %v369_v34 = vrot.slane %v346_v52, %v368_v25  ;;  %v920_v25 = vld [vmem:[#allocation9 + $0x258] sm:$0xff] }
 0x1ee   :  { %1446 = vmatpush3.msra.mxu1 %v881_v29  ;;  %1415 = vmatpush3.msra.mxu0 %v847_v36  ;;  %v372_v29 = vsub.s32 5, %v1815_v49 }
 0x1ef   :  { %1447 = vmatprep.subr.mxu1 %v896_v31  ;;  %1416 = vmatprep.subr.mxu0 %v862_v38 }
 0x1f0   :  { %1448 = vmatpush3.msra.mxu1 %v880_v33  ;;  %1417 = vmatpush3.msra.mxu0 %v846_v40  ;;  %v373_v40 = vrot.slane %v346_v52, %v372_v29  ;;  %v952_v29 = vld [vmem:[#allocation9 + $0x358] sm:$0xff] }
 0x1f1   :  { %1449 = vmatprep.subr.mxu1 %v895_v35  ;;  %1418 = vmatprep.subr.mxu0 %v861_v42  ;;  %v377_v35 = vrot.slane %v346_v52, %v376_v26 }
 0x1f2   :  { %1450 = vmatpush3.msra.mxu1 %v879_v37  ;;  %1419 = vmatpush3.msra.mxu0 %v845_v44 }
 0x1f3   :  { %1451 = vmatprep.subr.mxu1 %v894_v39  ;;  %1458 = vmatprep.subr.mxu0 %v940_v46 }
 0x1f4   :  { %1452 = vmatpush3.msra.mxu1 %v878_v41  ;;  %v381_v41 = vrot.slane %v346_v52, %v380_v30  ;;  %v935_v30 = vld [vmem:[#allocation9 + $0x2d0] sm:$0xff] }
 0x1f5   :  { %1453 = vmatprep.subr.mxu1 %v893_v43 }
 0x1f6   :  { %1454 = vmatpush3.msra.mxu1 %v877_v45 }
 0x1f7   :  { %1493 = vmatprep.subr.mxu1 %v972_v47 }
 0x255   :  { %v466_v58 = vpop.f32.mrf.mxu1  ;;  %v537_v59 = vpop.f32.mrf.mxu0 }
 0x256   :  { %v467_v60 = vadd.f32 %v466_v58, %v353_v55  ;;  %v538_v61 = vadd.f32 %v537_v59, %v361_v15 }
 0x257   :  { %v468_v62 = vpop.f32.mrf.mxu1  ;;  %v539_v63 = vpop.f32.mrf.mxu0 }
 0x258   :  { %v755_v0 = vmul.f32 %v467_v60, %v467_v60  ;;  %v757_v1 = vmul.f32 %v538_v61, %v538_v61  ;;  %v469_v2 = vadd.f32 %v468_v62, %v357_v56  ;;  %v540_v3 = vadd.f32 %v539_v63, %v365_v57  ;;  %v924_v56 = vld [vmem:[#allocation9 + $0x278] sm:$0xff]  ;;  %v939_v63 = vld [vmem:[#allocation9 + $0x2f0] sm:$0xff] }
 0x259   :  { %v956_v62 = vld [vmem:[#allocation9 + $0x378] sm:$0xff] }
 0x25a   :  { %v765_v5 = vmul.f32 %v755_v0, %v467_v60  ;;  %v767_v6 = vmul.f32 %v757_v1, %v538_v61  ;;  %v756_v7 = vmul.f32 %v469_v2, %v469_v2  ;;  %v758_v8 = vmul.f32 %v540_v3, %v540_v3  ;;  %v971_v0 = vld [vmem:[#allocation9 + $0x3f0] sm:$0xff] }
 0x25b   :  { %v923_v1 = vld [vmem:[#allocation9 + $0x270] sm:$0xff] }
 0x25c   :  { %v775_v9 = vmul.f32 0.044715, %v765_v5  ;;  %v777_v10 = vmul.f32 0.044715, %v767_v6  ;;  %v766_v11 = vmul.f32 %v756_v7, %v469_v2  ;;  %v768_v12 = vmul.f32 %v758_v8, %v540_v3  ;;  %v955_v5 = vld [vmem:[#allocation9 + $0x370] sm:$0xff]  ;;  %v938_v6 = vld [vmem:[#allocation9 + $0x2e8] sm:$0xff] }
 0x25d   :  { %v970_v7 = vld [vmem:[#allocation9 + $0x3e8] sm:$0xff] }
 0x25e   :  { %v785_v13 = vadd.f32 %v775_v9, %v467_v60  ;;  %v787_v14 = vadd.f32 %v777_v10, %v538_v61  ;;  %v776_v16 = vmul.f32 0.044715, %v766_v11  ;;  %v778_v17 = vmul.f32 0.044715, %v768_v12  ;;  %v922_v8 = vld [vmem:[#allocation9 + $0x268] sm:$0xff] }
 0x260   :  { %v795_v18 = vmul.f32 0.7978846, %v785_v13  ;;  %v797_v19 = vmul.f32 0.7978846, %v787_v14  ;;  %v786_v20 = vadd.f32 %v776_v16, %v469_v2  ;;  %v788_v21 = vadd.f32 %v778_v17, %v540_v3  ;;  %v954_v13 = vld [vmem:[#allocation9 + $0x368] sm:$0xff]  ;;  %v937_v14 = vld [vmem:[#allocation9 + $0x2e0] sm:$0xff] }
 0x261   :  { %v969_v16 = vld [vmem:[#allocation9 + $0x3e0] sm:$0xff] }
 0x262   :  { %1580 = vtanh.f32 %v795_v18  ;;  %v796_v22 = vmul.f32 0.7978846, %v786_v20  ;;  %v798_v23 = vmul.f32 0.7978846, %v788_v21  ;;  %v921_v17 = vld [vmem:[#allocation9 + $0x260] sm:$0xff] }
 0x263   :  { %1582 = vtanh.f32 %v797_v19 }
 0x264   :  { %1584 = vtanh.f32 %v796_v22  ;;  %v953_v22 = vld [vmem:[#allocation9 + $0x360] sm:$0xff] }
 0x265   :  { %1586 = vtanh.f32 %v798_v23  ;;  %v936_v23 = vld [vmem:[#allocation9 + $0x2d8] sm:$0xff] }
 0x26f   :  { %v1581_v24 = vpop.eup %1580 }
 0x270   :  { %v1583_v27 = vpop.eup %1582  ;;  %v815_v4 = vadd.f32 1.0, %v1581_v24  ;;  %v968_v24 = vld [vmem:[#allocation9 + $0x3d8] sm:$0xff] }
 0x271   :  { %v1585_v28 = vpop.eup %1584  ;;  %v817_v31 = vadd.f32 1.0, %v1583_v27 }
 0x272   :  { %v1587_v32 = vpop.eup %1586  ;;  %v816_v33 = vadd.f32 1.0, %v1585_v28  ;;  %v825_v38 = vmul.f32 0.5, %v815_v4 }
 0x273   :  { %v818_v36 = vadd.f32 1.0, %v1587_v32  ;;  %v827_v39 = vmul.f32 0.5, %v817_v31  ;;  %v967_v31 = vld [vmem:[#allocation9 + $0x3d0] sm:$0xff] }
 0x274   :  { %v826_v37 = vmul.f32 0.5, %v816_v33  ;;  %v835_v55 = vmul.f32 %v825_v38, %v467_v60  ;;  %v919_v32 = vld [vmem:[#allocation9 + $0x250] sm:$0xff]  ;;  %v918_v38 = vld [vmem:[#allocation9 + $0x248] sm:$0xff] }
 0x275   :  { %v828_v42 = vmul.f32 0.5, %v818_v36  ;;  %v837_v15 = vmul.f32 %v827_v39, %v538_v61  ;;  %v934_v36 = vld [vmem:[#allocation9 + $0x2c8] sm:$0xff] }
 0x276   :  { %v608_v43 = vpop.f32.mrf.mxu1  ;;  %v679_v44 = vpop.f32.mrf.mxu0  ;;  %v836_v45 = vmul.f32 %v826_v37, %v469_v2  ;;  %v966_v37 = vld [vmem:[#allocation9 + $0x3c8] sm:$0xff] }
 0x277   :  { %v1829_v46 = vadd.f32 %v608_v43, %v369_v34  ;;  %v1831_v47 = vadd.f32 %v679_v44, %v377_v35  ;;  %v838_v48 = vmul.f32 %v828_v42, %v540_v3  ;;  %v951_v35 = vld [vmem:[#allocation9 + $0x350] sm:$0xff]  ;;  %v950_v39 = vld [vmem:[#allocation9 + $0x348] sm:$0xff]  ;;  %v917_v42 = vld [vmem:[#allocation9 + $0x240] sm:$0xff] }
 0x278   :  { %v610_v51 = vpop.f32.mrf.mxu1  ;;  %v681_v54 = vpop.f32.mrf.mxu0  ;;  %1076 = vmatprep.mubr.f32.mxu0 %v836_v45  ;;  %v949_v43 = vld [vmem:[#allocation9 + $0x340] sm:$0xff]  ;;  %v932_v44 = vld [vmem:[#allocation9 + $0x2b8] sm:$0xff] }
 0x279   :  { %v759_v57 = vmul.f32 %v1829_v46, %v1829_v46  ;;  %v761_v52 = vmul.f32 %v1831_v47, %v1831_v47  ;;  %v1837_v58 = vadd.f32 %v610_v51, %v373_v40  ;;  %v1839_v59 = vadd.f32 %v681_v54, %v381_v41  ;;  %1146 = vmatprep.mubr.f32.mxu1 %v838_v48  ;;  %v933_v40 = vld [vmem:[#allocation9 + $0x2c0] sm:$0xff]  ;;  %v964_v45 = vld [vmem:[#allocation9 + $0x3b8] sm:$0xff]  ;;  %v931_v54 = vld [vmem:[#allocation9 + $0x2b0] sm:$0xff] }
 0x27a   :  { %1077 = vmatmul.mubr.f32.vlgmr.msra.gmra.mxu0 %v835_v55  ;;  %1147 = vmatmul.mubr.f32.vlgmr.msra.gmra.mxu1 %v837_v15  ;;  %v965_v41 = vld [vmem:[#allocation9 + $0x3c0] sm:$0xff]  ;;  %v916_v48 = vld [vmem:[#allocation9 + $0x238] sm:$0xff]  ;;  %v963_v55 = vld [vmem:[#allocation9 + $0x3b0] sm:$0xff] }
 0x27b   :  { %v769_v60 = vmul.f32 %v759_v57, %v1829_v46  ;;  %v771_v61 = vmul.f32 %v761_v52, %v1831_v47  ;;  %v760_v2 = vmul.f32 %v1837_v58, %v1837_v58  ;;  %v762_v3 = vmul.f32 %v1839_v59, %v1839_v59  ;;  %1459 = vmatpush3.msra.mxu0 %v924_v56  ;;  %v948_v51 = vld [vmem:[#allocation9 + $0x338] sm:$0xff]  ;;  %v915_v15 = vld [vmem:[#allocation9 + $0x230] sm:$0xff]  ;;  %v930_v57 = vld [vmem:[#allocation9 + $0x2a8] sm:$0xff] }
 0x27c   :  { %1494 = vmatpush3.msra.mxu1 %v956_v62  ;;  %1460 = vmatprep.subr.mxu0 %v939_v63  ;;  %v947_v56 = vld [vmem:[#allocation9 + $0x330] sm:$0xff]  ;;  %v962_v52 = vld [vmem:[#allocation9 + $0x3a8] sm:$0xff] }
 0x27d   :  { %v779_v9 = vmul.f32 0.044715, %v769_v60  ;;  %v781_v10 = vmul.f32 0.044715, %v771_v61  ;;  %v770_v11 = vmul.f32 %v760_v2, %v1837_v58  ;;  %v772_v12 = vmul.f32 %v762_v3, %v1839_v59  ;;  %1495 = vmatprep.subr.mxu1 %v971_v0  ;;  %1461 = vmatpush3.msra.mxu0 %v923_v1  ;;  %v914_v62 = vld [vmem:[#allocation9 + $0x228] sm:$0xff]  ;;  %v929_v0 = vld [vmem:[#allocation9 + $0x2a0] sm:$0xff] }
 0x27e   :  { %1496 = vmatpush3.msra.mxu1 %v955_v5  ;;  %1462 = vmatprep.subr.mxu0 %v938_v6  ;;  %v946_v63 = vld [vmem:[#allocation9 + $0x328] sm:$0xff]  ;;  %v961_v1 = vld [vmem:[#allocation9 + $0x3a0] sm:$0xff]  ;;  %v928_v2 = vld [vmem:[#allocation9 + $0x298] sm:$0xff] }
 0x27f   :  { %v789_v18 = vadd.f32 %v779_v9, %v1829_v46  ;;  %v791_v19 = vadd.f32 %v781_v10, %v1831_v47  ;;  %v780_v20 = vmul.f32 0.044715, %v770_v11  ;;  %v782_v21 = vmul.f32 0.044715, %v772_v12  ;;  %1497 = vmatprep.subr.mxu1 %v970_v7  ;;  %1463 = vmatpush3.msra.mxu0 %v922_v8  ;;  %v913_v60 = vld [vmem:[#allocation9 + $0x220] sm:$0xff]  ;;  %v960_v5 = vld [vmem:[#allocation9 + $0x398] sm:$0xff] }
 0x280   :  { %1498 = vmatpush3.msra.mxu1 %v954_v13  ;;  %1464 = vmatprep.subr.mxu0 %v937_v14  ;;  %v945_v61 = vld [vmem:[#allocation9 + $0x320] sm:$0xff]  ;;  %v912_v6 = vld [vmem:[#allocation9 + $0x218] sm:$0xff]  ;;  %v927_v9 = vld [vmem:[#allocation9 + $0x290] sm:$0xff] }
 0x281   :  { %v799_v26 = vmul.f32 0.7978846, %v789_v18  ;;  %v801_v27 = vmul.f32 0.7978846, %v791_v19  ;;  %v790_v4 = vadd.f32 %v780_v20, %v1837_v58  ;;  %v792_v28 = vadd.f32 %v782_v21, %v1839_v59  ;;  %1499 = vmatprep.subr.mxu1 %v969_v16  ;;  %1465 = vmatpush3.msra.mxu0 %v921_v17  ;;  %v944_v8 = vld [vmem:[#allocation9 + $0x318] sm:$0xff]  ;;  %v959_v13 = vld [vmem:[#allocation9 + $0x390] sm:$0xff] }
 0x282   :  { %1500 = vmatpush3.msra.mxu1 %v953_v22  ;;  %1466 = vmatprep.subr.mxu0 %v936_v23  ;;  %v347_v10 = vld [vmem:[#allocation8 + $0x8] sm:$0x3]  ;;  %v911_v14 = vld [vmem:[#allocation9 + $0x210] sm:$0xff]  ;;  %v926_v19 = vld [vmem:[#allocation9 + $0x288] sm:$0xff] }
 0x283   :  { %1588 = vtanh.f32 %v799_v26  ;;  %v800_v33 = vmul.f32 0.7978846, %v790_v4  ;;  %v802_v34 = vmul.f32 0.7978846, %v792_v28  ;;  %1501 = vmatprep.subr.mxu1 %v968_v24  ;;  %1467 = vmatpush3.msra.mxu0 %v920_v25  ;;  %v943_v18 = vld [vmem:[#allocation9 + $0x310] sm:$0xff]  ;;  %v385_v21 = vrot.slane %v347_v10, %v352_v50  ;;  %v958_v22 = vld [vmem:[#allocation9 + $0x388] sm:$0xff] }
 0x284   :  { %1590 = vtanh.f32 %v801_v27  ;;  %1502 = vmatpush3.msra.mxu1 %v952_v29  ;;  %1468 = vmatprep.subr.mxu0 %v935_v30  ;;  %v910_v23 = vld [vmem:[#allocation9 + $0x208] sm:$0xff]  ;;  %v925_v26 = vld [vmem:[#allocation9 + $0x280] sm:$0xff]  ;;  %v389_v28 = vrot.slane %v347_v10, %v356_v53  ;;  %v1004_v53 = vld [vmem:[#allocation9 + $0x4f8] sm:$0xff] }
 0x285   :  { %1592 = vtanh.f32 %v800_v33  ;;  %1503 = vmatprep.subr.mxu1 %v967_v31  ;;  %1469 = vmatpush3.msra.mxu0 %v919_v32  ;;  %v942_v25 = vld [vmem:[#allocation9 + $0x308] sm:$0xff]  ;;  %v957_v29 = vld [vmem:[#allocation9 + $0x380] sm:$0xff] }
 0x286   :  { %1594 = vtanh.f32 %v802_v34  ;;  %1504 = vmatpush3.msra.mxu1 %v951_v35  ;;  %1470 = vmatprep.subr.mxu0 %v934_v36  ;;  %v909_v30 = vld [vmem:[#allocation9 + $0x200] sm:$0xff] }
 0x287   :  { %1505 = vmatprep.subr.mxu1 %v966_v37  ;;  %1471 = vmatpush3.msra.mxu0 %v918_v38  ;;  %v941_v34 = vld [vmem:[#allocation9 + $0x300] sm:$0xff] }
 0x288   :  { %1506 = vmatpush3.msra.mxu1 %v950_v39  ;;  %1472 = vmatprep.subr.mxu0 %v933_v40  ;;  %v988_v40 = vld [vmem:[#allocation9 + $0x478] sm:$0xff]  ;;  %v993_v10 = vld [vmem:[#allocation9 + $0x4a0] sm:$0xff] }
 0x289   :  { %1507 = vmatprep.subr.mxu1 %v965_v41  ;;  %1473 = vmatpush3.msra.mxu0 %v917_v42  ;;  %v1003_v41 = vld [vmem:[#allocation9 + $0x4f0] sm:$0xff] }
 0x28a   :  { %1508 = vmatpush3.msra.mxu1 %v949_v43  ;;  %1474 = vmatprep.subr.mxu0 %v932_v44  ;;  %v1002_v43 = vld [vmem:[#allocation9 + $0x4e8] sm:$0xff] }
 0x28b   :  { %1509 = vmatprep.subr.mxu1 %v964_v45  ;;  %1475 = vmatpush3.msra.mxu0 %v916_v48  ;;  %v986_v48 = vld [vmem:[#allocation9 + $0x468] sm:$0xff] }
 0x28c   :  { %1510 = vmatpush3.msra.mxu1 %v948_v51  ;;  %1476 = vmatprep.subr.mxu0 %v931_v54 }
 0x28d   :  { %1511 = vmatprep.subr.mxu1 %v963_v55  ;;  %1477 = vmatpush3.msra.mxu0 %v915_v15  ;;  %v985_v55 = vld [vmem:[#allocation9 + $0x460] sm:$0xff]  ;;  %v1000_v15 = vld [vmem:[#allocation9 + $0x4d8] sm:$0xff] }
 0x28e   :  { %1512 = vmatpush3.msra.mxu1 %v947_v56  ;;  %1478 = vmatprep.subr.mxu0 %v930_v57 }
 0x28f   :  { %1513 = vmatprep.subr.mxu1 %v962_v52  ;;  %1479 = vmatpush3.msra.mxu0 %v914_v62  ;;  %v984_v52 = vld [vmem:[#allocation9 + $0x458] sm:$0xff]  ;;  %v999_v62 = vld [vmem:[#allocation9 + $0x4d0] sm:$0xff] }
 0x290   :  { %v1589_v3 = vpop.eup %1588  ;;  %1514 = vmatpush3.msra.mxu1 %v946_v63  ;;  %1480 = vmatprep.subr.mxu0 %v929_v0  ;;  %v983_v0 = vld [vmem:[#allocation9 + $0x450] sm:$0xff] }
 0x291   :  { %v1591_v7 = vpop.eup %1590  ;;  %1515 = vmatprep.subr.mxu1 %v961_v1  ;;  %1481 = vmatpush3.msra.mxu0 %v913_v60  ;;  %v819_v11 = vadd.f32 1.0, %v1589_v3  ;;  %v998_v1 = vld [vmem:[#allocation9 + $0x4c8] sm:$0xff]  ;;  %v996_v3 = vld [vmem:[#allocation9 + $0x4b8] sm:$0xff] }
 0x292   :  { %v1593_v12 = vpop.eup %1592  ;;  %1516 = vmatpush3.msra.mxu1 %v945_v61  ;;  %1482 = vmatprep.subr.mxu0 %v928_v2  ;;  %v821_v16 = vadd.f32 1.0, %v1591_v7  ;;  %v982_v60 = vld [vmem:[#allocation9 + $0x448] sm:$0xff]  ;;  %v997_v61 = vld [vmem:[#allocation9 + $0x4c0] sm:$0xff]  ;;  %v979_v7 = vld [vmem:[#allocation9 + $0x430] sm:$0xff] }
 0x293   :  { %v1595_v17 = vpop.eup %1594  ;;  %1517 = vmatprep.subr.mxu1 %v960_v5  ;;  %1483 = vmatpush3.msra.mxu0 %v912_v6  ;;  %v820_v20 = vadd.f32 1.0, %v1593_v12  ;;  %v829_v4 = vmul.f32 0.5, %v819_v11  ;;  %v981_v2 = vld [vmem:[#allocation9 + $0x440] sm:$0xff]  ;;  %v980_v5 = vld [vmem:[#allocation9 + $0x438] sm:$0xff]  ;;  %v995_v6 = vld [vmem:[#allocation9 + $0x4b0] sm:$0xff] }
 0x294   :  { %1518 = vmatpush3.msra.mxu1 %v944_v8  ;;  %1484 = vmatprep.subr.mxu0 %v927_v9  ;;  %v822_v24 = vadd.f32 1.0, %v1595_v17  ;;  %v831_v32 = vmul.f32 0.5, %v821_v16  ;;  %v994_v8 = vld [vmem:[#allocation9 + $0x4a8] sm:$0xff]  ;;  %v977_v11 = vld [vmem:[#allocation9 + $0x420] sm:$0xff] }
 0x295   :  { %1519 = vmatprep.subr.mxu1 %v959_v13  ;;  %1485 = vmatpush3.msra.mxu0 %v911_v14  ;;  %v830_v27 = vmul.f32 0.5, %v820_v20  ;;  %v839_v49 = vmul.f32 %v829_v4, %v1829_v46  ;;  %v987_v46 = vld [vmem:[#allocation9 + $0x470] sm:$0xff]  ;;  %v978_v9 = vld [vmem:[#allocation9 + $0x428] sm:$0xff]  ;;  %v992_v13 = vld [vmem:[#allocation9 + $0x498] sm:$0xff] }
 0x296   :  { %1520 = vmatpush3.msra.mxu1 %v943_v18  ;;  %1486 = vmatprep.subr.mxu0 %v926_v19  ;;  %v832_v31 = vmul.f32 0.5, %v822_v24  ;;  %v976_v14 = vld [vmem:[#allocation9 + $0x418] sm:$0xff]  ;;  %v991_v18 = vld [vmem:[#allocation9 + $0x490] sm:$0xff] }
 0x297   :  { %v750_v33 = vpop.f32.mrf.mxu1  ;;  %1521 = vmatprep.subr.mxu1 %v958_v22  ;;  %1487 = vmatpush3.msra.mxu0 %v910_v23  ;;  %v840_v50 = vmul.f32 %v830_v27, %v1837_v58  ;;  %v841_v58 = vmul.f32 %v831_v32, %v1831_v47  ;;  %v1001_v47 = vld [vmem:[#allocation9 + $0x4e0] sm:$0xff]  ;;  %v975_v19 = vld [vmem:[#allocation9 + $0x410] sm:$0xff]  ;;  %v974_v22 = vld [vmem:[#allocation9 + $0x408] sm:$0xff] }
 0x298   :  { %v1858_v35 = vadd.f32 %v750_v33, %v385_v21  ;;  %1522 = vmatpush3.msra.mxu1 %v942_v25  ;;  %1488 = vmatprep.subr.mxu0 %v925_v26  ;;  %v842_v36 = vmul.f32 %v832_v31, %v1839_v59  ;;  %v990_v21 = vld [vmem:[#allocation9 + $0x488] sm:$0xff]  ;;  %v989_v25 = vld [vmem:[#allocation9 + $0x480] sm:$0xff] }
 0x299   :  { %v752_v37 = vpop.f32.mrf.mxu1  ;;  %1523 = vmatprep.subr.mxu1 %v957_v29  ;;  %1489 = vmatpush3.msra.mxu0 %v909_v30  ;;  %v973_v26 = vld [vmem:[#allocation9 + $0x400] sm:$0xff] }
 0x29a   :  { %v763_v38 = vmul.f32 %v1858_v35, %v1858_v35  ;;  %v1864_v39 = vadd.f32 %v752_v37, %v389_v28  ;;  %1216 = vmatprep.mubr.f32.mxu0 %v840_v50  ;;  %1524 = vmatpush3.msra.mxu1 %v941_v34  ;;  %v1381_v33 = vld [vmem:[#allocation11] ss:$0 sm:$0xff] }
 0x29b   :  { %1286 = vmatprep.mubr.f32.mxu1 %v842_v36  ;;  %1217 = vmatmul.mubr.f32.vlgmr.msra.gmra.mxu0 %v839_v49 }
 0x29c   :  { %v773_v59 = vmul.f32 %v763_v38, %v1858_v35  ;;  %v764_v42 = vmul.f32 %v1864_v39, %v1864_v39  ;;  %1287 = vmatmul.mubr.f32.vlgmr.msra.gmra.mxu1 %v841_v58  ;;  %1528 = vmatprep.subr.mxu0 %v1004_v53 }
 0x29d   :  { %1529 = vmatpush3.msra.mxu0 %v988_v40 }
 0x29e   :  { %v783_v44 = vmul.f32 0.044715, %v773_v59  ;;  %v774_v45 = vmul.f32 %v764_v42, %v1864_v39  ;;  %1530 = vmatprep.subr.mxu0 %v1003_v41 }
 0x29f   :  { %1531 = vmatpush3.msra.mxu0 %v987_v46 }
 0x2a0   :  { %v793_v51 = vadd.f32 %v783_v44, %v1858_v35  ;;  %v784_v54 = vmul.f32 0.044715, %v774_v45  ;;  %1532 = vmatprep.subr.mxu0 %v1002_v43 }
 0x2a1   :  { %1533 = vmatpush3.msra.mxu0 %v986_v48 }
 0x2a2   :  { %v803_v56 = vmul.f32 0.7978846, %v793_v51  ;;  %v794_v57 = vadd.f32 %v784_v54, %v1864_v39  ;;  %1534 = vmatprep.subr.mxu0 %v1001_v47 }
 0x2a3   :  { %1535 = vmatpush3.msra.mxu0 %v985_v55 }
 0x2a4   :  { %1596 = vtanh.f32 %v803_v56  ;;  %v804_v63 = vmul.f32 0.7978846, %v794_v57  ;;  %1536 = vmatprep.subr.mxu0 %v1000_v15 }
 0x2a5   :  { %1537 = vmatpush3.msra.mxu0 %v984_v52 }
 0x2a6   :  { %1598 = vtanh.f32 %v804_v63  ;;  %1538 = vmatprep.subr.mxu0 %v999_v62 }
 0x2a7   :  { %1539 = vmatpush3.msra.mxu0 %v983_v0 }
 0x2a8   :  { %1540 = vmatprep.subr.mxu0 %v998_v1 }
 0x2a9   :  { %1541 = vmatpush3.msra.mxu0 %v982_v60 }
 0x2aa   :  { %1542 = vmatprep.subr.mxu0 %v997_v61 }
 0x2ab   :  { %1543 = vmatpush3.msra.mxu0 %v981_v2 }
 0x2ac   :  { %1544 = vmatprep.subr.mxu0 %v996_v3 }
 0x2ad   :  { %1545 = vmatpush3.msra.mxu0 %v980_v5 }
 0x2ae   :  { %1546 = vmatprep.subr.mxu0 %v995_v6 }
 0x2af   :  { %1547 = vmatpush3.msra.mxu0 %v979_v7 }
 0x2b0   :  { %1548 = vmatprep.subr.mxu0 %v994_v8 }
 0x2b1   :  { %v1597_v12 = vpop.eup %1596  ;;  %1549 = vmatpush3.msra.mxu0 %v978_v9 }
 0x2b2   :  { %1550 = vmatprep.subr.mxu0 %v993_v10  ;;  %v823_v16 = vadd.f32 1.0, %v1597_v12 }
 0x2b3   :  { %v1599_v17 = vpop.eup %1598  ;;  %1551 = vmatpush3.msra.mxu0 %v977_v11 }
 0x2b4   :  { %1552 = vmatprep.subr.mxu0 %v992_v13  ;;  %v824_v20 = vadd.f32 1.0, %v1599_v17  ;;  %v833_v24 = vmul.f32 0.5, %v823_v16 }
 0x2b5   :  { %1553 = vmatpush3.msra.mxu0 %v976_v14 }
 0x2b6   :  { %1554 = vmatprep.subr.mxu0 %v991_v18  ;;  %v834_v23 = vmul.f32 0.5, %v824_v20  ;;  %v843_v4 = vmul.f32 %v833_v24, %v1858_v35 }
 0x2b7   :  { %1555 = vmatpush3.msra.mxu0 %v975_v19 }
 0x2b8   :  { %1556 = vmatprep.subr.mxu0 %v990_v21  ;;  %v844_v27 = vmul.f32 %v834_v23, %v1864_v39 }
 0x2b9   :  { %1557 = vmatpush3.msra.mxu0 %v974_v22 }
 0x2ba   :  { %1558 = vmatprep.subr.mxu0 %v989_v25  ;;  %1356 = vmatprep.mubr.f32.mxu0 %v844_v27 }
 0x2bb   :  { %1559 = vmatpush3.msra.mxu0 %v973_v26 }
 0x2bc   :  { %1357 = vmatmul.mubr.f32.vlgmr.msra.gmra.mxu0 %v843_v4 }
 0x33a   :  { %v1420_v28 = vpop.f32.mrf.mxu0  ;;  %v1455_v30 = vpop.f32.mrf.mxu1 }
 0x33c   :  { %v1421_v29 = vpop.f32.mrf.mxu0  ;;  %v1456_v50 = vpop.f32.mrf.mxu1 }
 0x33d   :  { %v1422_v32 = vadd.f32 %v1421_v29, %v1420_v28  ;;  %v1457_v49 = vadd.f32 %v1456_v50, %v1455_v30 }
 0x33f   :  { %v1079_v36 = vadd.f32 %v1422_v32, %v1381_v33 }
 0x341   :  { %v1149_v38 = vadd.f32 %v1457_v49, %v1079_v36 }
 0x35b   :  { %v1490_v31 = vpop.f32.mrf.mxu0 }
 0x35c   :  { %v1525_v37 = vpop.f32.mrf.mxu1 }
 0x35d   :  { %v1491_v34 = vpop.f32.mrf.mxu0 }
 0x35e   :  { %v1492_v53 = vadd.f32 %v1491_v34, %v1490_v31  ;;  %v1526_v39 = vpop.f32.mrf.mxu1 }
 0x35f   :  { %v1527_v41 = vadd.f32 %v1526_v39, %v1525_v37 }
 0x360   :  { %v1219_v58 = vadd.f32 %v1492_v53, %v1149_v38 }
 0x362   :  { %v1289_v59 = vadd.f32 %v1527_v41, %v1219_v58 }
 0x37c   :  { %v1560_v40 = vpop.f32.mrf.mxu0 }
 0x37e   :  { %v1561_v35 = vpop.f32.mrf.mxu0 }
 0x37f   :  { %v1562_v42 = vadd.f32 %v1561_v35, %v1560_v40 }
 0x381   :  { %v1359_v46 = vadd.f32 %v1562_v42, %v1289_v59 }
 0x383   :  { %1362 = vst [vmem:[#allocation12] sm:$0x3] %v1359_v46 }
 0x384   :  { %1711 = shalt.err (!%p1708_p1)
}
 0x385   :  { %1372 = dma.vmem_to_hbm [thread:$0]  %s1370_s6, 32, %s1885_s7, [#allocation5]  }
 0x386   :  { %1726 = dma.done.wait [#allocation5], 32  }
 0x387   :  { %1727 = vsyncadd [#allocation5], 4294967264 }
 0x388   :  { %1376 = vsyncpa [#allocation4], 1 }
 0x389   :  { %1377 = vsyncpa [#allocation7], 1 }
 0x38a   :  { %1378 = vsyncpa [#allocation10], 1 }
 0x38b   :  { %1379 = vsyncpa [#allocation5], 1 }

</bundles_post_ra>
